<compile_context>
chip_gen: v7x
topology: tpu7x:2x2x1
jax: 0.10.0
libtpu: 0.0.40
codegen_flags: <defaults>
</compile_context>

<pallas_src>
import functools
import math

import jax
import jax.numpy as jnp
import numpy as np
from jax.experimental import pallas as pl
from jax.experimental.pallas import tpu as pltpu


# ----------------------------------------------------------------------------
# Pallas kernel
# ----------------------------------------------------------------------------
def attention_kernel(
    xq_ref,    # (tq, D)   bf16  query-tile rows of x
    xkv_ref,   # (S,  D)   bf16  full-sequence x for the K/V projections
    wq_ref,    # (D, Dq)   bf16  (columns pre-permuted to half-split RoPE layout)
    wk_ref,    # (D, Dk)   bf16  (columns pre-permuted)
    wv_ref,    # (D, Dk)   bf16
    wo_ref,    # (Dq, D)   bf16
    qg_ref,    # (1, Dq)   f32   q-LayerNorm gamma (permuted, 1/sqrt(hd) folded in)
    qb_ref,    # (1, Dq)   f32   q-LayerNorm beta  (permuted, 1/sqrt(hd) folded in)
    kg_ref,    # (1, Dk)   f32   k-LayerNorm gamma (permuted)
    kb_ref,    # (1, Dk)   f32   k-LayerNorm beta  (permuted)
    cosq_ref,  # (tq, hd//2) f32
    sinq_ref,  # (tq, hd//2) f32
    cosk_ref,  # (S,  hd//2) f32
    sink_ref,  # (S,  hd//2) f32
    o_ref,     # (tq, D)   f32
    *,
    n_heads,
    n_kv_heads,
    head_dim,
):
    f32 = jnp.float32
    bf16 = jnp.bfloat16
    hd = head_dim
    half = hd // 2
    n_rep = n_heads // n_kv_heads

    # --- q/k/v projections: bf16 operands on the MXU, f32 accumulation ---
    q = jnp.dot(xq_ref[...], wq_ref[...], preferred_element_type=f32)   # (tq, Dq)
    k = jnp.dot(xkv_ref[...], wk_ref[...], preferred_element_type=f32)  # (S, Dk)
    v = jnp.dot(xkv_ref[...], wv_ref[...], preferred_element_type=f32)  # (S, Dk)

    # --- qk LayerNorm (f32, eps = 1e-5, over the full projected dim) ---
    def layernorm(t, gam, bet):
        mu = jnp.mean(t, axis=-1, keepdims=True)
        var = jnp.mean((t - mu) * (t - mu), axis=-1, keepdims=True)
        return (t - mu) * jax.lax.rsqrt(var + 1e-5) * gam + bet

    q = layernorm(q, qg_ref[...], qb_ref[...])   # 1/sqrt(hd) folded into gamma/beta
    k = layernorm(k, kg_ref[...], kb_ref[...])

    cos_q = cosq_ref[...]
    sin_q = sinq_ref[...]
    cos_k = cosk_ref[...]
    sin_k = sink_ref[...]

    # RoPE in half-split per-head layout (wrapper permuted the weight columns),
    # so the "rotate" is a pure slice/recombine — no permutation matmul.
    def rope(t, c, s):
        tr = t[:, :half]
        ti = t[:, half:]
        return jnp.concatenate([tr * c - ti * s, tr * s + ti * c], axis=-1)

    tq = q.shape[0]
    acc = jnp.zeros((tq, o_ref.shape[-1]), f32)

    # GQA-grouped, non-causal attention.
    for kv in range(n_kv_heads):
        kh = rope(k[:, kv * hd:(kv + 1) * hd], cos_k, sin_k).astype(bf16)   # (S, hd)
        vh = v[:, kv * hd:(kv + 1) * hd].astype(bf16)                       # (S, hd)

        # Stack this group's n_rep query heads along rows (bigger MXU M dim).
        q_rows = jnp.concatenate(
            [rope(q[:, (kv * n_rep + r) * hd:(kv * n_rep + r + 1) * hd],
                  cos_q, sin_q)
             for r in range(n_rep)], axis=0).astype(bf16)                   # (n_rep*tq, hd)

        # Scores (scale already folded into q); contraction on head_dim
        # without an explicit transpose of kh.
        s = jax.lax.dot_general(q_rows, kh, (((1,), (1,)), ((), ())),
                                preferred_element_type=f32)                 # (n_rep*tq, S)
        s = s - jnp.max(s, axis=-1, keepdims=True)
        p = jnp.exp(s)
        inv = pl.reciprocal(jnp.sum(p, axis=-1, keepdims=True), approx=True)
        p = (p * inv).astype(bf16)
        pv = jnp.dot(p, vh, preferred_element_type=f32)                     # (n_rep*tq, hd)

        # Fold the output projection in per head: no concatenate of head
        # outputs and no full (tq, Dq) attention buffer kept live.
        for r in range(n_rep):
            h = kv * n_rep + r
            acc = acc + jnp.dot(pv[r * tq:(r + 1) * tq, :].astype(bf16),
                                wo_ref[h * hd:(h + 1) * hd, :],
                                preferred_element_type=f32)

    o_ref[...] = acc


# ----------------------------------------------------------------------------
# Wrapper
# ----------------------------------------------------------------------------
def attention_forward(x, params, freqs_cos, freqs_sin, *,
                      n_heads, n_kv_heads, tq=None):
    """x: (B, S, D) f32; freqs_cos/sin: (S, head_dim//2) f32."""
    B, S, D = x.shape
    head_dim = D // n_heads
    half = head_dim // 2
    Dq = n_heads * head_dim
    Dk = n_kv_heads * head_dim

    if tq is None:
        tq = S if S <= 128 else 128
    assert S % tq == 0 and (tq % 8 == 0 or tq == S), "bad query tile size"
    n_qt = S // tq

    # Per-head half-split permutation: even (real) features first, odd (imag)
    # second.  q.k dot products are invariant as long as q and k use the same
    # per-head permutation; V / wo are untouched.
    def half_split_perm(n_h):
        idx = []
        for h in range(n_h):
            base = h * head_dim
            idx.extend(base + 2 * np.arange(half))
            idx.extend(base + 2 * np.arange(half) + 1)
        return np.asarray(idx, np.int32)

    permq = half_split_perm(n_heads)
    permk = half_split_perm(n_kv_heads)

    scale = 1.0 / math.sqrt(head_dim)

    # Weights cast to bf16 (half the DMA bytes / VMEM residency).
    wq_t = jnp.asarray(params["wq"]).T[:, permq].astype(jnp.bfloat16)   # (D, Dq)
    wk_t = jnp.asarray(params["wk"]).T[:, permk].astype(jnp.bfloat16)   # (D, Dk)
    wv_t = jnp.asarray(params["wv"]).T.astype(jnp.bfloat16)             # (D, Dk)
    wo_t = jnp.asarray(params["wo"]).T.astype(jnp.bfloat16)             # (Dq, D)

    # LayerNorm params permuted to match; 1/sqrt(head_dim) folded into q side.
    qg = (params["q_gamma"][permq] * scale).reshape(1, Dq).astype(jnp.float32)
    qb = (params["q_beta"][permq] * scale).reshape(1, Dq).astype(jnp.float32)
    kg = params["k_gamma"][permk].reshape(1, Dk).astype(jnp.float32)
    kb = params["k_beta"][permk].reshape(1, Dk).astype(jnp.float32)

    x_bf = x.astype(jnp.bfloat16)
    cos = freqs_cos.astype(jnp.float32)   # (S, head_dim//2)
    sin = freqs_sin.astype(jnp.float32)

    kernel = functools.partial(attention_kernel, n_heads=n_heads,
                               n_kv_heads=n_kv_heads, head_dim=head_dim)

    rep = lambda b, qi: (0, 0)            # replicated across the grid

    flops = int(2 * B * S * D * (Dq + 2 * Dk)     # q/k/v projections
                + 4 * B * S * S * Dq              # scores + PV
                + 2 * B * S * Dq * D)             # output projection
    transcendentals = int(B * n_heads * S * S)
    bytes_accessed = int(2 * B * S * D                        # x (bf16)
                         + 2 * (D * Dq + 2 * D * Dk + Dq * D)  # weights (bf16)
                         + 4 * B * S * D)                     # output (f32)

    return pl.pallas_call(
        kernel,
        out_shape=jax.ShapeDtypeStruct((B, S, D), jnp.float32),
        grid_spec=pltpu.PrefetchScalarGridSpec(
            num_scalar_prefetch=0,
            grid=(B, n_qt),
            in_specs=[
                pl.BlockSpec((None, tq, D), lambda b, qi: (b, qi, 0)),  # x (q tile)
                pl.BlockSpec((None, S, D), lambda b, qi: (b, 0, 0)),    # x (full, K/V)
                pl.BlockSpec((D, Dq), rep),                             # wq^T
                pl.BlockSpec((D, Dk), rep),                             # wk^T
                pl.BlockSpec((D, Dk), rep),                             # wv^T
                pl.BlockSpec((Dq, D), rep),                             # wo^T
                pl.BlockSpec((1, Dq), rep),                             # q gamma
                pl.BlockSpec((1, Dq), rep),                             # q beta
                pl.BlockSpec((1, Dk), rep),                             # k gamma
                pl.BlockSpec((1, Dk), rep),                             # k beta
                pl.BlockSpec((tq, half), lambda b, qi: (qi, 0)),        # cos (q rows)
                pl.BlockSpec((tq, half), lambda b, qi: (qi, 0)),        # sin (q rows)
                pl.BlockSpec((S, half), rep),                           # cos (full S)
                pl.BlockSpec((S, half), rep),                           # sin (full S)
            ],
            out_specs=pl.BlockSpec((None, tq, D), lambda b, qi: (b, qi, 0)),
        ),
        compiler_params=pltpu.CompilerParams(
            dimension_semantics=("parallel", "parallel"),
            vmem_limit_bytes=48 * 1024 * 1024),
        cost_estimate=pl.CostEstimate(flops=flops,
                                      transcendentals=transcendentals,
                                      bytes_accessed=bytes_accessed),
    )(x_bf, x_bf, wq_t, wk_t, wv_t, wo_t, qg, qb, kg, kb, cos, sin, cos, sin)


# ----------------------------------------------------------------------------
# Pure-JAX reference (mirrors the PyTorch float32 SDPA path)
# ----------------------------------------------------------------------------
def attention_reference(x, params, freqs_cos, freqs_sin, *, n_heads, n_kv_heads):
    hp = jax.lax.Precision.HIGHEST
    B, S, D = x.shape
    head_dim = D // n_heads
    n_rep = n_heads // n_kv_heads

    q = jnp.einsum("bsd,fd->bsf", x, params["wq"], precision=hp)
    k = jnp.einsum("bsd,fd->bsf", x, params["wk"], precision=hp)
    v = jnp.einsum("bsd,fd->bsf", x, params["wv"], precision=hp)

    def ln(t, g, b):
        mu = jnp.mean(t, axis=-1, keepdims=True)
        var = jnp.mean((t - mu) ** 2, axis=-1, keepdims=True)
        return (t - mu) / jnp.sqrt(var + 1e-5) * g + b

    q = ln(q, params["q_gamma"], params["q_beta"])
    k = ln(k, params["k_gamma"], params["k_beta"])

    def rope(t, n_h):
        t = t.reshape(B, S, n_h, head_dim // 2, 2)
        tr, ti = t[..., 0], t[..., 1]
        c = freqs_cos[None, :, None, :]
        s = freqs_sin[None, :, None, :]
        outr = tr * c - ti * s
        outi = tr * s + ti * c
        return jnp.stack([outr, outi], axis=-1).reshape(B, S, n_h * head_dim)

    q = rope(q, n_heads).reshape(B, S, n_heads, head_dim)
    k = rope(k, n_kv_heads).reshape(B, S, n_kv_heads, head_dim)
    v = v.reshape(B, S, n_kv_heads, head_dim)
    k = jnp.repeat(k, n_rep, axis=2)
    v = jnp.repeat(v, n_rep, axis=2)

    scale = 1.0 / math.sqrt(head_dim)
    s = jnp.einsum("bqhd,bkhd->bhqk", q, k, precision=hp) * scale
    p = jax.nn.softmax(s, axis=-1)
    o = jnp.einsum("bhqk,bkhd->bqhd", p, v, precision=hp)
    o = o.reshape(B, S, n_heads * head_dim)
    return jnp.einsum("bsf,df->bsd", o, params["wo"], precision=hp)


# ----------------------------------------------------------------------------
if __name__ == "__main__":
    # Small, module-consistent shapes
    B, S = 2, 16
    dim, n_heads, n_kv_heads = 64, 4, 2
    head_dim = dim // n_heads
    Dq, Dk = n_heads * head_dim, n_kv_heads * head_dim

    key = jax.random.PRNGKey(0)
    kx, kq, kk, kv, ko = jax.random.split(key, 5)

    x = jax.random.normal(kx, (B, S, dim), jnp.float32)

    params = {
        # nn.Linear weights: (out_features, in_features), no bias
        "wq": 0.05 * jax.random.normal(kq, (Dq, dim), jnp.float32),
        "wk": 0.05 * jax.random.normal(kk, (Dk, dim), jnp.float32),
        "wv": 0.05 * jax.random.normal(kv, (Dk, dim), jnp.float32),
        "wo": 0.05 * jax.random.normal(ko, (dim, Dq), jnp.float32),
        # LayerNorm default init (qk_norm=True): gamma=1, beta=0
        "q_gamma": jnp.ones((Dq,), jnp.float32),
        "q_beta": jnp.zeros((Dq,), jnp.float32),
        "k_gamma": jnp.ones((Dk,), jnp.float32),
        "k_beta": jnp.zeros((Dk,), jnp.float32),
    }

    # precompute_freqs_cis (llama-style), kept as cos/sin of shape (S, hd//2)
    theta = 10000.0
    inv_freq = 1.0 / (theta ** (jnp.arange(0, head_dim, 2, dtype=jnp.float32) / head_dim))
    t = jnp.arange(S, dtype=jnp.float32)
    angles = jnp.outer(t, inv_freq)                 # (S, hd//2)
    freqs_cos = jnp.cos(angles)
    freqs_sin = jnp.sin(angles)

    out = attention_forward(x, params, freqs_cos, freqs_sin,
                            n_heads=n_heads, n_kv_heads=n_kv_heads, tq=8)
    out = jax.block_until_ready(out)

    ref = attention_reference(x, params, freqs_cos, freqs_sin,
                              n_heads=n_heads, n_kv_heads=n_kv_heads)
    ref = jax.block_until_ready(ref)

    assert out.shape == (B, S, dim)
    max_err = float(jnp.max(jnp.abs(out - ref)))
    # bf16 MXU operands with f32 accumulation vs. an all-f32 reference.
    assert max_err < 2e-2, f"mismatch vs reference: {max_err}"

    print("KERNEL_OK")
</pallas_src>

<mosaic_0001>
module attributes {stable_mosaic.version = 11 : i64} {
  func.func @attention_kernel(%arg0: i32, %arg1: i32, %arg2: memref<1x8x64xbf16, #tpu.memory_space<vmem>>, %arg3: memref<1x16x64xbf16, #tpu.memory_space<vmem>>, %arg4: memref<64x64xbf16, #tpu.memory_space<vmem>>, %arg5: memref<64x32xbf16, #tpu.memory_space<vmem>>, %arg6: memref<64x32xbf16, #tpu.memory_space<vmem>>, %arg7: memref<64x64xbf16, #tpu.memory_space<vmem>>, %arg8: memref<1x64xf32, #tpu.memory_space<vmem>>, %arg9: memref<1x64xf32, #tpu.memory_space<vmem>>, %arg10: memref<1x32xf32, #tpu.memory_space<vmem>>, %arg11: memref<1x32xf32, #tpu.memory_space<vmem>>, %arg12: memref<8x8xf32, #tpu.memory_space<vmem>>, %arg13: memref<8x8xf32, #tpu.memory_space<vmem>>, %arg14: memref<16x8xf32, #tpu.memory_space<vmem>>, %arg15: memref<16x8xf32, #tpu.memory_space<vmem>>, %arg16: memref<1x8x64xf32, #tpu.memory_space<vmem>>) attributes {dimension_semantics = [#tpu.dimension_semantics<parallel>, #tpu.dimension_semantics<parallel>], iteration_bounds = array<i64: 2, 2>, scalar_prefetch = 0 : i64, scratch_operands = 0 : i64, tpu.core_type = #tpu.core_type<tc>, window_params = [{transform_indices = @transform_0, window_bounds = array<i64: 1, 8, 64>}, {transform_indices = @transform_1, window_bounds = array<i64: 1, 16, 64>}, {pipeline_mode = #tpu.pipeline_mode<synchronous>, transform_indices = @transform_2, window_bounds = array<i64: 64, 64>}, {pipeline_mode = #tpu.pipeline_mode<synchronous>, transform_indices = @transform_3, window_bounds = array<i64: 64, 32>}, {pipeline_mode = #tpu.pipeline_mode<synchronous>, transform_indices = @transform_4, window_bounds = array<i64: 64, 32>}, {pipeline_mode = #tpu.pipeline_mode<synchronous>, transform_indices = @transform_5, window_bounds = array<i64: 64, 64>}, {pipeline_mode = #tpu.pipeline_mode<synchronous>, transform_indices = @transform_6, window_bounds = array<i64: 1, 64>}, {pipeline_mode = #tpu.pipeline_mode<synchronous>, transform_indices = @transform_7, window_bounds = array<i64: 1, 64>}, {pipeline_mode = #tpu.pipeline_mode<synchronous>, transform_indices = @transform_8, window_bounds = array<i64: 1, 32>}, {pipeline_mode = #tpu.pipeline_mode<synchronous>, transform_indices = @transform_9, window_bounds = array<i64: 1, 32>}, {transform_indices = @transform_10, window_bounds = array<i64: 8, 8>}, {transform_indices = @transform_11, window_bounds = array<i64: 8, 8>}, {pipeline_mode = #tpu.pipeline_mode<synchronous>, transform_indices = @transform_12, window_bounds = array<i64: 16, 8>}, {pipeline_mode = #tpu.pipeline_mode<synchronous>, transform_indices = @transform_13, window_bounds = array<i64: 16, 8>}, {transform_indices = @transform_14, window_bounds = array<i64: 1, 8, 64>}]} {
    %c0 = arith.constant 0 : index
    %c0_0 = arith.constant 0 : index
    %c0_1 = arith.constant 0 : index
    %0 = vector.load %arg2[%c0, %c0_0, %c0_1] : memref<1x8x64xbf16, #tpu.memory_space<vmem>>, vector<1x8x64xbf16>
    %1 = vector.shape_cast %0 : vector<1x8x64xbf16> to vector<8x64xbf16>
    %c0_2 = arith.constant 0 : index
    %c0_3 = arith.constant 0 : index
    %2 = vector.load %arg4[%c0_2, %c0_3] : memref<64x64xbf16, #tpu.memory_space<vmem>>, vector<64x64xbf16>
    %cst = arith.constant dense<0.000000e+00> : vector<8x64xf32>
    %3 = tpu.matmul %1, %2, %cst {dimension_numbers = #tpu.dot_dimension_numbers<[1], [0], [0], [1], [0, 0, 1, 1], [], []>} : vector<8x64xbf16>, vector<64x64xbf16>, vector<8x64xf32> -> vector<8x64xf32>
    %c0_4 = arith.constant 0 : index
    %c0_5 = arith.constant 0 : index
    %c0_6 = arith.constant 0 : index
    %4 = vector.load %arg3[%c0_4, %c0_5, %c0_6] : memref<1x16x64xbf16, #tpu.memory_space<vmem>>, vector<1x16x64xbf16>
    %5 = vector.shape_cast %4 : vector<1x16x64xbf16> to vector<16x64xbf16>
    %c0_7 = arith.constant 0 : index
    %c0_8 = arith.constant 0 : index
    %6 = vector.load %arg5[%c0_7, %c0_8] : memref<64x32xbf16, #tpu.memory_space<vmem>>, vector<64x32xbf16>
    %cst_9 = arith.constant dense<0.000000e+00> : vector<16x32xf32>
    %7 = tpu.matmul %5, %6, %cst_9 {dimension_numbers = #tpu.dot_dimension_numbers<[1], [0], [0], [1], [0, 0, 1, 1], [], []>} : vector<16x64xbf16>, vector<64x32xbf16>, vector<16x32xf32> -> vector<16x32xf32>
    %c0_10 = arith.constant 0 : index
    %c0_11 = arith.constant 0 : index
    %c0_12 = arith.constant 0 : index
    %8 = vector.load %arg3[%c0_10, %c0_11, %c0_12] : memref<1x16x64xbf16, #tpu.memory_space<vmem>>, vector<1x16x64xbf16>
    %9 = vector.shape_cast %8 : vector<1x16x64xbf16> to vector<16x64xbf16>
    %c0_13 = arith.constant 0 : index
    %c0_14 = arith.constant 0 : index
    %10 = vector.load %arg6[%c0_13, %c0_14] : memref<64x32xbf16, #tpu.memory_space<vmem>>, vector<64x32xbf16>
    %cst_15 = arith.constant dense<0.000000e+00> : vector<16x32xf32>
    %11 = tpu.matmul %9, %10, %cst_15 {dimension_numbers = #tpu.dot_dimension_numbers<[1], [0], [0], [1], [0, 0, 1, 1], [], []>} : vector<16x64xbf16>, vector<64x32xbf16>, vector<16x32xf32> -> vector<16x32xf32>
    %c0_16 = arith.constant 0 : index
    %c0_17 = arith.constant 0 : index
    %12 = vector.load %arg8[%c0_16, %c0_17] : memref<1x64xf32, #tpu.memory_space<vmem>>, vector<1x64xf32>
    %c0_18 = arith.constant 0 : index
    %c0_19 = arith.constant 0 : index
    %13 = vector.load %arg9[%c0_18, %c0_19] : memref<1x64xf32, #tpu.memory_space<vmem>>, vector<1x64xf32>
    %cst_20 = arith.constant dense<0.000000e+00> : vector<8xf32>
    %14 = vector.multi_reduction <add>, %3, %cst_20 [1] : vector<8x64xf32> to vector<8xf32>
    %15 = vector.shape_cast %14 : vector<8xf32> to vector<8x1xf32>
    %cst_21 = arith.constant 6.400000e+01 : f32
    %16 = vector.broadcast %cst_21 : f32 to vector<8x1xf32>
    %17 = arith.divf %15, %16 : vector<8x1xf32>
    %18 = vector.broadcast %17 : vector<8x1xf32> to vector<8x64xf32>
    %19 = arith.subf %3, %18 : vector<8x64xf32>
    %20 = vector.broadcast %17 : vector<8x1xf32> to vector<8x64xf32>
    %21 = arith.subf %3, %20 : vector<8x64xf32>
    %22 = arith.mulf %19, %21 : vector<8x64xf32>
    %cst_22 = arith.constant dense<0.000000e+00> : vector<8xf32>
    %23 = vector.multi_reduction <add>, %22, %cst_22 [1] : vector<8x64xf32> to vector<8xf32>
    %24 = vector.shape_cast %23 : vector<8xf32> to vector<8x1xf32>
    %cst_23 = arith.constant 6.400000e+01 : f32
    %25 = vector.broadcast %cst_23 : f32 to vector<8x1xf32>
    %26 = arith.divf %24, %25 : vector<8x1xf32>
    %27 = vector.broadcast %17 : vector<8x1xf32> to vector<8x64xf32>
    %28 = arith.subf %3, %27 : vector<8x64xf32>
    %cst_24 = arith.constant 9.99999974E-6 : f32
    %29 = vector.broadcast %cst_24 : f32 to vector<8x1xf32>
    %30 = arith.addf %26, %29 : vector<8x1xf32>
    %31 = math.rsqrt %30 : vector<8x1xf32>
    %32 = vector.broadcast %31 : vector<8x1xf32> to vector<8x64xf32>
    %33 = arith.mulf %28, %32 : vector<8x64xf32>
    %34 = vector.broadcast %12 : vector<1x64xf32> to vector<8x64xf32>
    %35 = arith.mulf %33, %34 : vector<8x64xf32>
    %36 = vector.broadcast %13 : vector<1x64xf32> to vector<8x64xf32>
    %37 = arith.addf %35, %36 : vector<8x64xf32>
    %c0_25 = arith.constant 0 : index
    %c0_26 = arith.constant 0 : index
    %38 = vector.load %arg10[%c0_25, %c0_26] : memref<1x32xf32, #tpu.memory_space<vmem>>, vector<1x32xf32>
    %c0_27 = arith.constant 0 : index
    %c0_28 = arith.constant 0 : index
    %39 = vector.load %arg11[%c0_27, %c0_28] : memref<1x32xf32, #tpu.memory_space<vmem>>, vector<1x32xf32>
    %cst_29 = arith.constant dense<0.000000e+00> : vector<16xf32>
    %40 = vector.multi_reduction <add>, %7, %cst_29 [1] : vector<16x32xf32> to vector<16xf32>
    %41 = vector.shape_cast %40 : vector<16xf32> to vector<16x1xf32>
    %cst_30 = arith.constant 3.200000e+01 : f32
    %42 = vector.broadcast %cst_30 : f32 to vector<16x1xf32>
    %43 = arith.divf %41, %42 : vector<16x1xf32>
    %44 = vector.broadcast %43 : vector<16x1xf32> to vector<16x32xf32>
    %45 = arith.subf %7, %44 : vector<16x32xf32>
    %46 = vector.broadcast %43 : vector<16x1xf32> to vector<16x32xf32>
    %47 = arith.subf %7, %46 : vector<16x32xf32>
    %48 = arith.mulf %45, %47 : vector<16x32xf32>
    %cst_31 = arith.constant dense<0.000000e+00> : vector<16xf32>
    %49 = vector.multi_reduction <add>, %48, %cst_31 [1] : vector<16x32xf32> to vector<16xf32>
    %50 = vector.shape_cast %49 : vector<16xf32> to vector<16x1xf32>
    %cst_32 = arith.constant 3.200000e+01 : f32
    %51 = vector.broadcast %cst_32 : f32 to vector<16x1xf32>
    %52 = arith.divf %50, %51 : vector<16x1xf32>
    %53 = vector.broadcast %43 : vector<16x1xf32> to vector<16x32xf32>
    %54 = arith.subf %7, %53 : vector<16x32xf32>
    %cst_33 = arith.constant 9.99999974E-6 : f32
    %55 = vector.broadcast %cst_33 : f32 to vector<16x1xf32>
    %56 = arith.addf %52, %55 : vector<16x1xf32>
    %57 = math.rsqrt %56 : vector<16x1xf32>
    %58 = vector.broadcast %57 : vector<16x1xf32> to vector<16x32xf32>
    %59 = arith.mulf %54, %58 : vector<16x32xf32>
    %60 = vector.broadcast %38 : vector<1x32xf32> to vector<16x32xf32>
    %61 = arith.mulf %59, %60 : vector<16x32xf32>
    %62 = vector.broadcast %39 : vector<1x32xf32> to vector<16x32xf32>
    %63 = arith.addf %61, %62 : vector<16x32xf32>
    %c0_34 = arith.constant 0 : index
    %c0_35 = arith.constant 0 : index
    %64 = vector.load %arg12[%c0_34, %c0_35] : memref<8x8xf32, #tpu.memory_space<vmem>>, vector<8x8xf32>
    %c0_36 = arith.constant 0 : index
    %c0_37 = arith.constant 0 : index
    %65 = vector.load %arg13[%c0_36, %c0_37] : memref<8x8xf32, #tpu.memory_space<vmem>>, vector<8x8xf32>
    %c0_38 = arith.constant 0 : index
    %c0_39 = arith.constant 0 : index
    %66 = vector.load %arg14[%c0_38, %c0_39] : memref<16x8xf32, #tpu.memory_space<vmem>>, vector<16x8xf32>
    %c0_40 = arith.constant 0 : index
    %c0_41 = arith.constant 0 : index
    %67 = vector.load %arg15[%c0_40, %c0_41] : memref<16x8xf32, #tpu.memory_space<vmem>>, vector<16x8xf32>
    %cst_42 = arith.constant 0.000000e+00 : f32
    %68 = vector.broadcast %cst_42 : f32 to vector<8x64xf32>
    %69 = vector.extract_strided_slice %63 {offsets = [0, 0], sizes = [16, 16], strides = [1, 1]} : vector<16x32xf32> to vector<16x16xf32>
    %70 = vector.extract_strided_slice %69 {offsets = [0, 0], sizes = [16, 8], strides = [1, 1]} : vector<16x16xf32> to vector<16x8xf32>
    %71 = vector.extract_strided_slice %69 {offsets = [0, 8], sizes = [16, 8], strides = [1, 1]} : vector<16x16xf32> to vector<16x8xf32>
    %72 = arith.mulf %70, %66 : vector<16x8xf32>
    %73 = arith.mulf %71, %67 : vector<16x8xf32>
    %74 = arith.subf %72, %73 : vector<16x8xf32>
    %75 = arith.mulf %70, %67 : vector<16x8xf32>
    %76 = arith.mulf %71, %66 : vector<16x8xf32>
    %77 = arith.addf %75, %76 : vector<16x8xf32>
    %78 = tpu.concatenate %74, %77 in 1 : vector<16x8xf32>, vector<16x8xf32> -> vector<16x16xf32>
    %79 = arith.truncf %78 : vector<16x16xf32> to vector<16x16xbf16>
    %80 = vector.extract_strided_slice %11 {offsets = [0, 0], sizes = [16, 16], strides = [1, 1]} : vector<16x32xf32> to vector<16x16xf32>
    %81 = arith.truncf %80 : vector<16x16xf32> to vector<16x16xbf16>
    %82 = vector.extract_strided_slice %37 {offsets = [0, 0], sizes = [8, 16], strides = [1, 1]} : vector<8x64xf32> to vector<8x16xf32>
    %83 = vector.extract_strided_slice %82 {offsets = [0, 0], sizes = [8, 8], strides = [1, 1]} : vector<8x16xf32> to vector<8x8xf32>
    %84 = vector.extract_strided_slice %82 {offsets = [0, 8], sizes = [8, 8], strides = [1, 1]} : vector<8x16xf32> to vector<8x8xf32>
    %85 = arith.mulf %83, %64 : vector<8x8xf32>
    %86 = arith.mulf %84, %65 : vector<8x8xf32>
    %87 = arith.subf %85, %86 : vector<8x8xf32>
    %88 = arith.mulf %83, %65 : vector<8x8xf32>
    %89 = arith.mulf %84, %64 : vector<8x8xf32>
    %90 = arith.addf %88, %89 : vector<8x8xf32>
    %91 = tpu.concatenate %87, %90 in 1 : vector<8x8xf32>, vector<8x8xf32> -> vector<8x16xf32>
    %92 = vector.extract_strided_slice %37 {offsets = [0, 16], sizes = [8, 16], strides = [1, 1]} : vector<8x64xf32> to vector<8x16xf32>
    %93 = vector.extract_strided_slice %92 {offsets = [0, 0], sizes = [8, 8], strides = [1, 1]} : vector<8x16xf32> to vector<8x8xf32>
    %94 = vector.extract_strided_slice %92 {offsets = [0, 8], sizes = [8, 8], strides = [1, 1]} : vector<8x16xf32> to vector<8x8xf32>
    %95 = arith.mulf %93, %64 : vector<8x8xf32>
    %96 = arith.mulf %94, %65 : vector<8x8xf32>
    %97 = arith.subf %95, %96 : vector<8x8xf32>
    %98 = arith.mulf %93, %65 : vector<8x8xf32>
    %99 = arith.mulf %94, %64 : vector<8x8xf32>
    %100 = arith.addf %98, %99 : vector<8x8xf32>
    %101 = tpu.concatenate %97, %100 in 1 : vector<8x8xf32>, vector<8x8xf32> -> vector<8x16xf32>
    %102 = tpu.concatenate %91, %101 in 0 : vector<8x16xf32>, vector<8x16xf32> -> vector<16x16xf32>
    %103 = arith.truncf %102 : vector<16x16xf32> to vector<16x16xbf16>
    %cst_43 = arith.constant dense<0.000000e+00> : vector<16x16xf32>
    %104 = tpu.matmul %103, %79, %cst_43 {dimension_numbers = #tpu.dot_dimension_numbers<[1], [1], [0], [0], [0, 0, 1, 0], [], []>} : vector<16x16xbf16>, vector<16x16xbf16>, vector<16x16xf32> -> vector<16x16xf32>
    %cst_44 = arith.constant dense<0xFF800000> : vector<16xf32>
    %105 = vector.multi_reduction <maximumf>, %104, %cst_44 [1] : vector<16x16xf32> to vector<16xf32>
    %106 = vector.shape_cast %105 : vector<16xf32> to vector<16x1xf32>
    %107 = vector.broadcast %106 : vector<16x1xf32> to vector<16x16xf32>
    %108 = arith.subf %104, %107 : vector<16x16xf32>
    %109 = math.exp %108 : vector<16x16xf32>
    %cst_45 = arith.constant dense<0.000000e+00> : vector<16xf32>
    %110 = vector.multi_reduction <add>, %109, %cst_45 [1] : vector<16x16xf32> to vector<16xf32>
    %111 = vector.shape_cast %110 : vector<16xf32> to vector<16x1xf32>
    %112 = tpu.reciprocal %111 {approx = true} : vector<16x1xf32> -> vector<16x1xf32>
    %113 = vector.broadcast %112 : vector<16x1xf32> to vector<16x16xf32>
    %114 = arith.mulf %109, %113 : vector<16x16xf32>
    %115 = arith.truncf %114 : vector<16x16xf32> to vector<16x16xbf16>
    %cst_46 = arith.constant dense<0.000000e+00> : vector<16x16xf32>
    %116 = tpu.matmul %115, %81, %cst_46 {dimension_numbers = #tpu.dot_dimension_numbers<[1], [0], [0], [1], [0, 0, 1, 1], [], []>} : vector<16x16xbf16>, vector<16x16xbf16>, vector<16x16xf32> -> vector<16x16xf32>
    %117 = vector.extract_strided_slice %116 {offsets = [0, 0], sizes = [8, 16], strides = [1, 1]} : vector<16x16xf32> to vector<8x16xf32>
    %118 = arith.truncf %117 : vector<8x16xf32> to vector<8x16xbf16>
    %c0_47 = arith.constant 0 : index
    %c0_48 = arith.constant 0 : index
    %119 = vector.load %arg7[%c0_47, %c0_48] : memref<64x64xbf16, #tpu.memory_space<vmem>>, vector<16x64xbf16>
    %cst_49 = arith.constant dense<0.000000e+00> : vector<8x64xf32>
    %120 = tpu.matmul %118, %119, %cst_49 {dimension_numbers = #tpu.dot_dimension_numbers<[1], [0], [0], [1], [0, 0, 1, 1], [], []>} : vector<8x16xbf16>, vector<16x64xbf16>, vector<8x64xf32> -> vector<8x64xf32>
    %121 = arith.addf %68, %120 : vector<8x64xf32>
    %122 = vector.extract_strided_slice %116 {offsets = [8, 0], sizes = [8, 16], strides = [1, 1]} : vector<16x16xf32> to vector<8x16xf32>
    %123 = arith.truncf %122 : vector<8x16xf32> to vector<8x16xbf16>
    %c16 = arith.constant 16 : index
    %c0_50 = arith.constant 0 : index
    %124 = vector.load %arg7[%c16, %c0_50] : memref<64x64xbf16, #tpu.memory_space<vmem>>, vector<16x64xbf16>
    %cst_51 = arith.constant dense<0.000000e+00> : vector<8x64xf32>
    %125 = tpu.matmul %123, %124, %cst_51 {dimension_numbers = #tpu.dot_dimension_numbers<[1], [0], [0], [1], [0, 0, 1, 1], [], []>} : vector<8x16xbf16>, vector<16x64xbf16>, vector<8x64xf32> -> vector<8x64xf32>
    %126 = arith.addf %121, %125 : vector<8x64xf32>
    %127 = vector.extract_strided_slice %63 {offsets = [0, 16], sizes = [16, 16], strides = [1, 1]} : vector<16x32xf32> to vector<16x16xf32>
    %128 = vector.extract_strided_slice %127 {offsets = [0, 0], sizes = [16, 8], strides = [1, 1]} : vector<16x16xf32> to vector<16x8xf32>
    %129 = vector.extract_strided_slice %127 {offsets = [0, 8], sizes = [16, 8], strides = [1, 1]} : vector<16x16xf32> to vector<16x8xf32>
    %130 = arith.mulf %128, %66 : vector<16x8xf32>
    %131 = arith.mulf %129, %67 : vector<16x8xf32>
    %132 = arith.subf %130, %131 : vector<16x8xf32>
    %133 = arith.mulf %128, %67 : vector<16x8xf32>
    %134 = arith.mulf %129, %66 : vector<16x8xf32>
    %135 = arith.addf %133, %134 : vector<16x8xf32>
    %136 = tpu.concatenate %132, %135 in 1 : vector<16x8xf32>, vector<16x8xf32> -> vector<16x16xf32>
    %137 = arith.truncf %136 : vector<16x16xf32> to vector<16x16xbf16>
    %138 = vector.extract_strided_slice %11 {offsets = [0, 16], sizes = [16, 16], strides = [1, 1]} : vector<16x32xf32> to vector<16x16xf32>
    %139 = arith.truncf %138 : vector<16x16xf32> to vector<16x16xbf16>
    %140 = vector.extract_strided_slice %37 {offsets = [0, 32], sizes = [8, 16], strides = [1, 1]} : vector<8x64xf32> to vector<8x16xf32>
    %141 = vector.extract_strided_slice %140 {offsets = [0, 0], sizes = [8, 8], strides = [1, 1]} : vector<8x16xf32> to vector<8x8xf32>
    %142 = vector.extract_strided_slice %140 {offsets = [0, 8], sizes = [8, 8], strides = [1, 1]} : vector<8x16xf32> to vector<8x8xf32>
    %143 = arith.mulf %141, %64 : vector<8x8xf32>
    %144 = arith.mulf %142, %65 : vector<8x8xf32>
    %145 = arith.subf %143, %144 : vector<8x8xf32>
    %146 = arith.mulf %141, %65 : vector<8x8xf32>
    %147 = arith.mulf %142, %64 : vector<8x8xf32>
    %148 = arith.addf %146, %147 : vector<8x8xf32>
    %149 = tpu.concatenate %145, %148 in 1 : vector<8x8xf32>, vector<8x8xf32> -> vector<8x16xf32>
    %150 = vector.extract_strided_slice %37 {offsets = [0, 48], sizes = [8, 16], strides = [1, 1]} : vector<8x64xf32> to vector<8x16xf32>
    %151 = vector.extract_strided_slice %150 {offsets = [0, 0], sizes = [8, 8], strides = [1, 1]} : vector<8x16xf32> to vector<8x8xf32>
    %152 = vector.extract_strided_slice %150 {offsets = [0, 8], sizes = [8, 8], strides = [1, 1]} : vector<8x16xf32> to vector<8x8xf32>
    %153 = arith.mulf %151, %64 : vector<8x8xf32>
    %154 = arith.mulf %152, %65 : vector<8x8xf32>
    %155 = arith.subf %153, %154 : vector<8x8xf32>
    %156 = arith.mulf %151, %65 : vector<8x8xf32>
    %157 = arith.mulf %152, %64 : vector<8x8xf32>
    %158 = arith.addf %156, %157 : vector<8x8xf32>
    %159 = tpu.concatenate %155, %158 in 1 : vector<8x8xf32>, vector<8x8xf32> -> vector<8x16xf32>
    %160 = tpu.concatenate %149, %159 in 0 : vector<8x16xf32>, vector<8x16xf32> -> vector<16x16xf32>
    %161 = arith.truncf %160 : vector<16x16xf32> to vector<16x16xbf16>
    %cst_52 = arith.constant dense<0.000000e+00> : vector<16x16xf32>
    %162 = tpu.matmul %161, %137, %cst_52 {dimension_numbers = #tpu.dot_dimension_numbers<[1], [1], [0], [0], [0, 0, 1, 0], [], []>} : vector<16x16xbf16>, vector<16x16xbf16>, vector<16x16xf32> -> vector<16x16xf32>
    %cst_53 = arith.constant dense<0xFF800000> : vector<16xf32>
    %163 = vector.multi_reduction <maximumf>, %162, %cst_53 [1] : vector<16x16xf32> to vector<16xf32>
    %164 = vector.shape_cast %163 : vector<16xf32> to vector<16x1xf32>
    %165 = vector.broadcast %164 : vector<16x1xf32> to vector<16x16xf32>
    %166 = arith.subf %162, %165 : vector<16x16xf32>
    %167 = math.exp %166 : vector<16x16xf32>
    %cst_54 = arith.constant dense<0.000000e+00> : vector<16xf32>
    %168 = vector.multi_reduction <add>, %167, %cst_54 [1] : vector<16x16xf32> to vector<16xf32>
    %169 = vector.shape_cast %168 : vector<16xf32> to vector<16x1xf32>
    %170 = tpu.reciprocal %169 {approx = true} : vector<16x1xf32> -> vector<16x1xf32>
    %171 = vector.broadcast %170 : vector<16x1xf32> to vector<16x16xf32>
    %172 = arith.mulf %167, %171 : vector<16x16xf32>
    %173 = arith.truncf %172 : vector<16x16xf32> to vector<16x16xbf16>
    %cst_55 = arith.constant dense<0.000000e+00> : vector<16x16xf32>
    %174 = tpu.matmul %173, %139, %cst_55 {dimension_numbers = #tpu.dot_dimension_numbers<[1], [0], [0], [1], [0, 0, 1, 1], [], []>} : vector<16x16xbf16>, vector<16x16xbf16>, vector<16x16xf32> -> vector<16x16xf32>
    %175 = vector.extract_strided_slice %174 {offsets = [0, 0], sizes = [8, 16], strides = [1, 1]} : vector<16x16xf32> to vector<8x16xf32>
    %176 = arith.truncf %175 : vector<8x16xf32> to vector<8x16xbf16>
    %c32 = arith.constant 32 : index
    %c0_56 = arith.constant 0 : index
    %177 = vector.load %arg7[%c32, %c0_56] : memref<64x64xbf16, #tpu.memory_space<vmem>>, vector<16x64xbf16>
    %cst_57 = arith.constant dense<0.000000e+00> : vector<8x64xf32>
    %178 = tpu.matmul %176, %177, %cst_57 {dimension_numbers = #tpu.dot_dimension_numbers<[1], [0], [0], [1], [0, 0, 1, 1], [], []>} : vector<8x16xbf16>, vector<16x64xbf16>, vector<8x64xf32> -> vector<8x64xf32>
    %179 = arith.addf %126, %178 : vector<8x64xf32>
    %180 = vector.extract_strided_slice %174 {offsets = [8, 0], sizes = [8, 16], strides = [1, 1]} : vector<16x16xf32> to vector<8x16xf32>
    %181 = arith.truncf %180 : vector<8x16xf32> to vector<8x16xbf16>
    %c48 = arith.constant 48 : index
    %c0_58 = arith.constant 0 : index
    %182 = vector.load %arg7[%c48, %c0_58] : memref<64x64xbf16, #tpu.memory_space<vmem>>, vector<16x64xbf16>
    %cst_59 = arith.constant dense<0.000000e+00> : vector<8x64xf32>
    %183 = tpu.matmul %181, %182, %cst_59 {dimension_numbers = #tpu.dot_dimension_numbers<[1], [0], [0], [1], [0, 0, 1, 1], [], []>} : vector<8x16xbf16>, vector<16x64xbf16>, vector<8x64xf32> -> vector<8x64xf32>
    %184 = arith.addf %179, %183 : vector<8x64xf32>
    %c0_60 = arith.constant 0 : index
    %c0_61 = arith.constant 0 : index
    %c0_62 = arith.constant 0 : index
    %185 = vector.load %arg16[%c0_60, %c0_61, %c0_62] : memref<1x8x64xf32, #tpu.memory_space<vmem>>, vector<1x8x64xf32>
    %186 = vector.shape_cast %185 : vector<1x8x64xf32> to vector<8x64xf32>
    %187 = vector.shape_cast %184 : vector<8x64xf32> to vector<1x8x64xf32>
    tpu.vector_store %arg16[%c0_60, %c0_61, %c0_62], %187 {strides = array<i32>} : memref<1x8x64xf32, #tpu.memory_space<vmem>>, vector<1x8x64xf32>,
    return
  }
  func.func @transform_0(%arg0: i32, %arg1: i32) -> (i32, i32, i32) {
    %c0_i32 = arith.constant 0 : i32
    %c0_i32_0 = arith.constant 0 : i32
    return %arg0, %arg1, %c0_i32 : i32, i32, i32
  }
  func.func @transform_1(%arg0: i32, %arg1: i32) -> (i32, i32, i32) {
    %c0_i32 = arith.constant 0 : i32
    %c0_i32_0 = arith.constant 0 : i32
    %c0_i32_1 = arith.constant 0 : i32
    return %arg0, %c0_i32, %c0_i32_0 : i32, i32, i32
  }
  func.func @transform_2(%arg0: i32, %arg1: i32) -> (i32, i32) {
    %c0_i32 = arith.constant 0 : i32
    %c0_i32_0 = arith.constant 0 : i32
    %c0_i32_1 = arith.constant 0 : i32
    return %c0_i32, %c0_i32_0 : i32, i32
  }
  func.func @transform_3(%arg0: i32, %arg1: i32) -> (i32, i32) {
    %c0_i32 = arith.constant 0 : i32
    %c0_i32_0 = arith.constant 0 : i32
    %c0_i32_1 = arith.constant 0 : i32
    return %c0_i32, %c0_i32_0 : i32, i32
  }
  func.func @transform_4(%arg0: i32, %arg1: i32) -> (i32, i32) {
    %c0_i32 = arith.constant 0 : i32
    %c0_i32_0 = arith.constant 0 : i32
    %c0_i32_1 = arith.constant 0 : i32
    return %c0_i32, %c0_i32_0 : i32, i32
  }
  func.func @transform_5(%arg0: i32, %arg1: i32) -> (i32, i32) {
    %c0_i32 = arith.constant 0 : i32
    %c0_i32_0 = arith.constant 0 : i32
    %c0_i32_1 = arith.constant 0 : i32
    return %c0_i32, %c0_i32_0 : i32, i32
  }
  func.func @transform_6(%arg0: i32, %arg1: i32) -> (i32, i32) {
    %c0_i32 = arith.constant 0 : i32
    %c0_i32_0 = arith.constant 0 : i32
    %c0_i32_1 = arith.constant 0 : i32
    return %c0_i32, %c0_i32_0 : i32, i32
  }
  func.func @transform_7(%arg0: i32, %arg1: i32) -> (i32, i32) {
    %c0_i32 = arith.constant 0 : i32
    %c0_i32_0 = arith.constant 0 : i32
    %c0_i32_1 = arith.constant 0 : i32
    return %c0_i32, %c0_i32_0 : i32, i32
  }
  func.func @transform_8(%arg0: i32, %arg1: i32) -> (i32, i32) {
    %c0_i32 = arith.constant 0 : i32
    %c0_i32_0 = arith.constant 0 : i32
    %c0_i32_1 = arith.constant 0 : i32
    return %c0_i32, %c0_i32_0 : i32, i32
  }
  func.func @transform_9(%arg0: i32, %arg1: i32) -> (i32, i32) {
    %c0_i32 = arith.constant 0 : i32
    %c0_i32_0 = arith.constant 0 : i32
    %c0_i32_1 = arith.constant 0 : i32
    return %c0_i32, %c0_i32_0 : i32, i32
  }
  func.func @transform_10(%arg0: i32, %arg1: i32) -> (i32, i32) {
    %c0_i32 = arith.constant 0 : i32
    %c0_i32_0 = arith.constant 0 : i32
    return %arg1, %c0_i32 : i32, i32
  }
  func.func @transform_11(%arg0: i32, %arg1: i32) -> (i32, i32) {
    %c0_i32 = arith.constant 0 : i32
    %c0_i32_0 = arith.constant 0 : i32
    return %arg1, %c0_i32 : i32, i32
  }
  func.func @transform_12(%arg0: i32, %arg1: i32) -> (i32, i32) {
    %c0_i32 = arith.constant 0 : i32
    %c0_i32_0 = arith.constant 0 : i32
    %c0_i32_1 = arith.constant 0 : i32
    return %c0_i32, %c0_i32_0 : i32, i32
  }
  func.func @transform_13(%arg0: i32, %arg1: i32) -> (i32, i32) {
    %c0_i32 = arith.constant 0 : i32
    %c0_i32_0 = arith.constant 0 : i32
    %c0_i32_1 = arith.constant 0 : i32
    return %c0_i32, %c0_i32_0 : i32, i32
  }
  func.func @transform_14(%arg0: i32, %arg1: i32) -> (i32, i32, i32) {
    %c0_i32 = arith.constant 0 : i32
    %c0_i32_0 = arith.constant 0 : i32
    return %arg0, %arg1, %c0_i32 : i32, i32, i32
  }
}

</mosaic_0001>

<bundles_post_ra>
// kernel: tpu_custom_call.1
= control target key start
LH: loop header
LB: loop body
LE: loop exit
PB: predicated region body
PF: predicated region fallthrough
CT: control target
= control target key end

     0   :  { %s2637_s0 = inlined_call_operand.vmem [shape: bf16[2,16,64], index: 0, kind: input, shape index: {}]   ;;  %s2638_s1 = inlined_call_operand.vmem [shape: bf16[2,16,64], index: 1, kind: input, shape index: {}]   ;;  %s2639_s2 = inlined_call_operand.vmem [shape: bf16[64,64], index: 2, kind: input, shape index: {}]   ;;  %s2640_s3 = inlined_call_operand.vmem [shape: bf16[64,32], index: 3, kind: input, shape index: {}]   ;;  %s2641_s4 = inlined_call_operand.vmem [shape: bf16[64,32], index: 4, kind: input, shape index: {}]   ;;  %s2642_s5 = inlined_call_operand.vmem [shape: bf16[64,64], index: 5, kind: input, shape index: {}]   ;;  %s2643_s6 = inlined_call_operand.vmem [shape: f32[1,64], index: 6, kind: input, shape index: {}]   ;;  %s2644_s7 = inlined_call_operand.vmem [shape: f32[1,64], index: 7, kind: input, shape index: {}]   ;;  %s2645_s8 = inlined_call_operand.vmem [shape: f32[1,32], index: 8, kind: input, shape index: {}]   ;;  %s2646_s9 = inlined_call_operand.vmem [shape: f32[1,32], index: 9, kind: input, shape index: {}]   ;;  %s2647_s10 = inlined_call_operand.vmem [shape: f32[16,8], index: 10, kind: input, shape index: {}]   ;;  %s2648_s11 = inlined_call_operand.vmem [shape: f32[16,8], index: 11, kind: input, shape index: {}]   ;;  %s2649_s12 = inlined_call_operand.vmem [shape: f32[16,8], index: 12, kind: input, shape index: {}]   ;;  %s2650_s13 = inlined_call_operand.vmem [shape: f32[16,8], index: 13, kind: input, shape index: {}]   ;;  %s2651_s14 = inlined_call_operand.hbm [shape: f32[2,16,64], index: 14, kind: output, shape index: {}]  }
   0x1   :  { %2666 = sst [smem:[#allocation17_spill]] %s2651_s14 }
   0x2   :  { %19 = vsyncpa [#allocation3], 0 }
   0x3   :  { %21 = vsyncpa [#allocation3 + $0x1], 0  ;;  %s2198_s29 = smov 0   ;;  %s2200_s30 = smov 0  }
   0x4   :  { %s2202_s15 = smov 0   ;;  %s2204_s16 = smov 0  }
   0x5   :  { %s2206_s17 = smov 0   ;;  %s2208_s18 = smov 0  }
   0x6   :  { %s2210_s19 = smov 0   ;;  %s2212_s20 = smov 0  }
   0x7 LB: > { %2667 = sst [smem:[#allocation5_spill]] %s2077_s29  ;;  %s1697_s21 = sadd.s32 4294967295, %s2105_s20   ;;  %s2105_s20 = sphi %s2212_s20, %s27_s20   ;;  %s2101_s19 = sphi %s2210_s19, %s2694_s19   ;;  %s2097_s18 = sphi %s2208_s18, %s2693_s18   ;;  %s2093_s17 = sphi %s2206_s17, %s2692_s17   ;;  %s2089_s16 = sphi %s2204_s16, %s2691_s16   ;;  %s2085_s15 = sphi %s2202_s15, %s2690_s15   ;;  %s2081_s30 = sphi %s2200_s30, %s2696_s30   ;;  %s2077_s29 = sphi %s2198_s29, %s2695_s29  }
   0x8   : > { %2668 = sst [smem:[#allocation6_spill]] %s2085_s15  ;;  %s1698_s22 = sadd.s32 4294967294, %s2105_s20  }
   0x9   : > { %2669 = sst [smem:[#allocation7_spill]] %s2089_s16  ;;  %s36_s23 = sadd.s32 1, %s2097_s18 }
   0xa   : > { %2670 = sst [smem:[#allocation8_spill]] %s2093_s17  ;;  %p37_p0 = scmp.ge.s32.totalorder %s36_s23, 2 }
   0xb   : > { %2671 = sst [smem:[#allocation9_spill]] %s2097_s18  ;;  %s39_s24 = sadd.s32 1, %s2101_s19 }
   0xc   : > { %2672 = sst [smem:[#allocation10_spill]] %s2101_s19  ;;  %p374_p1 = scmp.ne.s32.totalorder %s2085_s15, %s2081_s30 }
   0xd   : > { %2673 = sst [smem:[#allocation11_spill]] %s2105_s20  ;;  %p375_p2 = scmp.eq.s32.totalorder %s1697_s21, 3 }
   0xe   : > { %s2698_s23 = smov (%p37_p0, %s36_s23), 0  ;;  %s2700_s24 = smov (!%p37_p0, %s39_s24), %s2101_s19 }
   0xf   : > { %2674 = sst [smem:[#allocation12_spill]] %s2698_s23  ;;  %s360_s25 = ssub.s32 %s2097_s18, %s2698_s23 }
  0x10   : > { %p2249_p3 = por %p375_p2, %p374_p1  ;;  %p41_p4 = scmp.ge.s32.totalorder %s2700_s24, 2 }
  0x11   : > { %p380_p5 = scmp.ne.s32.totalorder %s2081_s30, %s2077_s29  ;;  %p381_p6 = scmp.eq.s32.totalorder %s1698_s22, 3 }
  0x12   : > { %s2675_s26 = scalar_select %p2249_p3, 1, 0 }
  0x13   : > { %p1701_p7 = scmp.ge.s32.totalorder %s2105_s20, 1  ;;  %s2702_s24 = smov (%p41_p4, %s2700_s24), 0 }
  0x14   : > { %2676 = sst [smem:[#allocation13_spill]] %s2675_s26  ;;  %p2258_p8 = por %p381_p6, %p380_p5 }
  0x15   : > { %2677 = sst [smem:[#allocation14_spill]] %s2702_s24  ;;  %p462_p9 = scmp.lt.s32.totalorder %s2105_s20, 5 }
  0x16   : > { %s2678_s27 = scalar_select %p2258_p8, 1, 0 }
  0x17   : > { %s359_s28 = ssub.s32 %s2101_s19, %s2702_s24  ;;  %s364_s21 = sadd.s32 1, %s2085_s15 }
  0x18   : > { %2679 = sst [smem:[#allocation15_spill]] %s2678_s27  ;;  %s361_s14 = sor.u32 %s360_s25, %s359_s28 }
  0x19   : > { %p463_p10 = pnand %p1701_p7, %p462_p9  ;;  %p362_p11 = scmp.eq.s32.totalorder %s361_s14, 0 }
  0x1a   : > { %v1972_v0 = vld [vmem:[%s2639_s2] sm:$0xff] (!%p463_p10)   ;;  %v2107_v1 = vmov (!%p463_p10), 0.0   ;;  %v1974_v3 = vld [vmem:[%s2639_s2 + $0x8] sm:$0xff] (!%p463_p10)   ;;  %vm2108_vm0 = vmmov (!%p463_p10), 0   ;;  %p524_p12 = scmp.lt.s32.totalorder (!%p463_p10), %s2093_s17, 1  ;;  %p526_p13 = scmp.lt.s32.totalorder (!%p463_p10), %s2089_s16, 1 }
  0x1b   : > { %s2267_s23 = scalar_select %p362_p11, %s2085_s15, %s364_s21  }
  0x1c   : > { %466 = sbr.rel (%p463_p10) target bundleno = 2587 (0xa1b), region = 76  ;;  %1778 = vmatprep.subr.bf16.mxu0 (!%p463_p10), %v2107_v1  ;;  %1790 = vmatprep.subr.bf16.mxu1 (!%p463_p10), %v2107_v1  ;;  %v1973_v2 = vld [vmem:[%s2640_s3] sm:$0xff] (!%p463_p10)   ;;  %v1975_v4 = vld [vmem:[%s2640_s3 + $0x8] sm:$0xff] (!%p463_p10)   ;;  %v1976_v5 = vld [vmem:[%s2639_s2 + $0x10] sm:$0xff] (!%p463_p10)   ;;  %vm579_vm1 = vcmask (!%p463_p10), 523264   ;;  %vm811_vm2 = vcmask (!%p463_p10), 261120  }
  0x1d   : > { %2680 = sst [smem:[#allocation16_spill]] %s2267_s23  ;;  %1779 = vmatpush3.bf16.msra.mxu0 (!%p463_p10), %v1972_v0  ;;  %1786 = vmatprep.mubr.msk.bf16.mxu0 (!%p463_p10), %vm2108_vm0, %v2107_v1  ;;  %v1977_v6 = vld [vmem:[%s2640_s3 + $0x10] sm:$0xff] (!%p463_p10)   ;;  %v1978_v7 = vld [vmem:[%s2639_s2 + $0x18] sm:$0xff] (!%p463_p10)   ;;  %v2339_v37 = vld [vmem:[%s2649_s12 + $0x8] sm:$0xff] (!%p463_p10)  ;;  %s2110_s25 = smov (!%p463_p10), 24   ;;  %vm913_vm3 = vcmask (!%p463_p10), 64512  }
  0x1e   : > { %1791 = vmatpush3.bf16.msra.mxu1 (!%p463_p10), %v1973_v2  ;;  %1780 = vmatprep.subr.bf16.mxu0 (!%p463_p10), %v2107_v1  ;;  %v1979_v8 = vld [vmem:[%s2640_s3 + $0x18] sm:$0xff] (!%p463_p10)   ;;  %v2354_v39 = vld [vmem:[%s2649_s12] sm:$0xff] (!%p463_p10)  ;;  %v2374_v42 = vld [vmem:[%s2650_s13 + $0x8] sm:$0xff] (!%p463_p10)  ;;  %s2112_s18 = smov (!%p463_p10), 120   ;;  %s2113_s14 = smov (!%p463_p10), 112   ;;  %vm981_vm4 = vcmask (!%p463_p10), 130048  }
  0x1f   : > { %1792 = vmatprep.subr.bf16.mxu1 (!%p463_p10), %v2107_v1  ;;  %1798 = vmatprep.mubr.msk.bf16.mxu1 (!%p463_p10), %vm2108_vm0, %v2107_v1  ;;  %v2369_v41 = vld [vmem:[%s2650_s13] sm:$0xff] (!%p463_p10)  ;;  %s2114_s26 = smov (!%p463_p10), 40   ;;  %s2115_s27 = smov (!%p463_p10), 56  }
  0x20   : > { %v1727_v54 = vld [vmem:[%s2645_s8] ss:$0 sm:$0xff] (!%p463_p10) }
  0x21   : > { %1781 = vmatpush3.bf16.msra.mxu0 (!%p463_p10), %v1974_v3  ;;  %v1728_v56 = vld [vmem:[%s2646_s9] ss:$0 sm:$0xff] (!%p463_p10) }
  0x22   : > { %1793 = vmatpush3.bf16.msra.mxu1 (!%p463_p10), %v1975_v4  ;;  %1782 = vmatprep.subr.bf16.mxu0 (!%p463_p10), %v2107_v1  ;;  %v1725_v63 = vld [vmem:[%s2643_s6] ss:$0 sm:$0xff] (!%p463_p10) }
  0x23   : > { %s525_s21 = scalar_select %p524_p12, %s2093_s17, 1  ;;  %1794 = vmatprep.subr.bf16.mxu1 %v2107_v1 }
  0x24   : > { %s2293_s22 = scalar_select %p526_p13, %s2089_s16, 1 }
  0x25   : > { %s1703_s28 = sshll.u32 %s525_s21, 1  ;;  %s1746_s19 = sshll.u32 %s525_s21, 3  ;;  %1783 = vmatpush3.bf16.msra.mxu0 %v1976_v5  ;;  %v1726_v5 = vld [vmem:[%s2644_s7] ss:$0 sm:$0xff] }
  0x26   : > { %s529_s24 = sadd.s32 %s1703_s28, %s2293_s22  ;;  %s536_s17 = scalar_lea.vmem %s2638_s1, %s1746_s19  ;;  %1795 = vmatpush3.bf16.msra.mxu1 %v1977_v6  ;;  %1784 = vmatprep.subr.bf16.mxu0 %v2107_v1 }
  0x27   : > { %s1704_s23 = sshll.u32 %s529_s24, 2  ;;  %1796 = vmatprep.subr.bf16.mxu1 %v2107_v1  ;;  %v2318_v10 = vld [vmem:[%s536_s17] sm:$0xff]   ;;  %s1707_s15 = sshll.u32 %s2293_s22, 3 }
  0x28   : > { %s531_s20 = scalar_lea.vmem %s2637_s0, %s1704_s23  ;;  %s540_s23 = scalar_lea.vmem %s2647_s10, %s1707_s15 }
  0x29   : > { %v546_v9 = vld [vmem:[%s531_s20] sm:$0xf]  ;;  %1785 = vmatpush3.bf16.msra.mxu0 %v1978_v7  ;;  %s2109_s24 = smov 8   ;;  %s544_s29 = scalar_lea.vmem %s2648_s11, %s1707_s15 }
  0x2a   : > { %1797 = vmatpush3.bf16.msra.mxu1 %v1979_v8  ;;  %1802 = vmatprep.subr.bf16.mxu0 %v2107_v1  ;;  %v2346_v38 = vld [vmem:[%s540_s23] sm:$0xff]  ;;  %s2111_s16 = smov 16   ;;  %s2117_s22 = smov 48  }
  0x2b   : > { %1814 = vmatprep.subr.bf16.mxu1 %v2107_v1  ;;  %v2358_v40 = vld [vmem:[%s544_s29] sm:$0xff]  ;;  %s2116_s29 = smov 32   ;;  %s2118_s28 = smov 104  }
  0x2c   : > { %1787 = vmatmul.mubr.msk.bf16.vlgmr.msra.gmra.mrb[0].mxu0 %vm579_vm1, %v546_v9  ;;  %s2119_s15 = smov 88   ;;  %s2120_s17 = smov 96  }
  0x2d   : > { %1799 = vmatmul.mubr.msk.bf16.vlgmr.msra.gmra.mrb[0].mxu1 %vm579_vm1, %v2318_v10  ;;  %1810 = vmatprep.mubr.msk.bf16.mxu0 %vm2108_vm0, %v2107_v1  ;;  %s2681_s23 = sld [smem:[#allocation8_spill]]  ;;  %s2684_s19 = sld [smem:[#allocation17_spill]] }
  0x2e   : > { %1816 = vmatprep.mubr.msk.bf16.mxu1 %vm2108_vm0, %v2107_v1 }
  0xff   : > { %v617_v11 = vpop.f32.mrb[0].mxu0 }
 0x100   : > { %v699_v12 = vpop.f32.mrb[0].mxu1  ;;  %v781_v13 = vsel %vm579_vm1, %v617_v11, 0.0  ;;  %v1788_v14 = vpop.f32.mrb[1].mxu0 }
 0x101   : > { %v1800_v15 = vpop.f32.mrb[1].mxu1  ;;  %v812_v16 = vsel %vm811_vm2, %v699_v12, 0.0  ;;  %782 = vadd.xlane.f32.xlu1 %v781_v13  ;;  %v620_v17 = vpop.f32.mrb[2].mxu0 }
 0x102   : > { %813 = vadd.xlane.f32.xlu0 %v812_v16  ;;  %v702_v18 = vpop.f32.mrb[2].mxu1  ;;  %v1789_v19 = vpop.f32.mrb[3].mxu0 }
 0x103   : > { %v1801_v20 = vpop.f32.mrb[3].mxu1  ;;  %v815_v21 = vsel %vm811_vm2, %v702_v18, 0.0 }
 0x106   : > { %816 = vadd.xlane.f32.xlu0 %v815_v21 }
 0x18e   : > { %v783_v22 = vpop.xlane.xlu1 %782 }
 0x18f   : > { %v814_v23 = vpop.xlane.xlu0 %813  ;;  %v785_v24 = vmul.f32 0.015625, %v783_v22 }
 0x190   : > { %v819_v25 = vmul.f32 0.03125, %v814_v23 }
 0x191   : > { %v786_v27 = vsub.f32 %v617_v11, %v785_v24 }
 0x192   : > { %v821_v26 = vsub.f32 %v699_v12, %v819_v25 }
 0x193   : > { %v817_v28 = vpop.xlane.xlu0 %816  ;;  %v787_v33 = vmul.f32 %v786_v27, %v786_v27 }
 0x194   : > { %v820_v29 = vmul.f32 0.03125, %v817_v28  ;;  %v823_v30 = vmul.f32 %v821_v26, %v821_v26 }
 0x195   : > { %v788_v36 = vsel %vm579_vm1, %v787_v33, 0.0 }
 0x196   : > { %v822_v31 = vsub.f32 %v702_v18, %v820_v29  ;;  %v825_v32 = vsel %vm811_vm2, %v823_v30, 0.0 }
 0x197   : > { %826 = vadd.xlane.f32.xlu1 %v825_v32 }
 0x198   : > { %v824_v34 = vmul.f32 %v822_v31, %v822_v31 }
 0x19a   : > { %v828_v35 = vsel %vm811_vm2, %v824_v34, 0.0 }
 0x19b   : > { %829 = vadd.xlane.f32.xlu0 %v828_v35  ;;  %789 = vadd.xlane.f32.xlu1 %v788_v36 }
 0x1ac   : > { %889 = vrot.lane.b32.xlu1 %v2339_v37, %s2109_s24 }
 0x1b0   : > { %931 = vrot.lane.b32.xlu1 %v2346_v38, %s2109_s24 }
 0x1b1   : > { %887 = vrot.lane.b32.xlu0 %v2354_v39, %s2109_s24 }
 0x1b4   : > { %949 = vrot.lane.b32.xlu1 %v2358_v40, %s2110_s25 }
 0x1b5   : > { %962 = vrot.lane.b32.xlu0 %v2346_v38, %s2110_s25 }
 0x1b8   : > { %865 = vrot.lane.b32.xlu1 %v2369_v41, %s2109_s24 }
 0x1b9   : > { %867 = vrot.lane.b32.xlu0 %v2374_v42, %s2109_s24 }
 0x1bc   : > { %920 = vrot.lane.b32.xlu1 %v2358_v40, %s2109_s24 }
 0x1bd   : > { %945 = vrot.lane.b32.xlu0 %v2346_v38, %s2111_s16 }
 0x224   : > { %v827_v43 = vpop.xlane.xlu1 %826 }
 0x225   : > { %v831_v44 = vmul.f32 0.03125, %v827_v43 }
 0x227   : > { %v833_v45 = vadd.f32 1e-05, %v831_v44 }
 0x228   : > { %v830_v46 = vpop.xlane.xlu0 %829  ;;  %v790_v47 = vpop.xlane.xlu1 %789 }
 0x229   : > { %1989 = vrsqrt.f32 %v833_v45  ;;  %v832_v48 = vmul.f32 0.03125, %v830_v46  ;;  %v791_v49 = vmul.f32 0.015625, %v790_v47 }
 0x22b   : > { %v834_v50 = vadd.f32 1e-05, %v832_v48  ;;  %v792_v51 = vadd.f32 1e-05, %v791_v49 }
 0x22c   : > { %v890_v52 = vpop.permute.xlu1 %889  ;;  %v888_v2 = vpop.permute.xlu0 %887 }
 0x22d   : > { %1991 = vrsqrt.f32 %v834_v50 }
 0x22e   : > { %1993 = vrsqrt.f32 %v792_v51 }
 0x230   : > { %v932_v59 = vpop.permute.xlu1 %931  ;;  %v963_v14 = vpop.permute.xlu0 %962 }
 0x233   : > { %v1990_v53 = vpop.eup %1989 }
 0x234   : > { %v837_v55 = vmul.f32 %v1990_v53, %v821_v26  ;;  %v950_v8 = vpop.permute.xlu1 %949  ;;  %v868_v18 = vpop.permute.xlu0 %867 }
 0x236   : > { %v845_v57 = vmul.f32 %v1727_v54, %v837_v55 }
 0x237   : > { %v1992_v58 = vpop.eup %1991 }
 0x238   : > { %v1994_v60 = vpop.eup %1993  ;;  %v2390_v61 = vadd.f32 %v1728_v56, %v845_v57  ;;  %v838_v62 = vmul.f32 %v1992_v58, %v822_v31  ;;  %v866_v15 = vpop.permute.xlu1 %865 }
 0x239   : > { %v794_v0 = vmul.f32 %v1994_v60, %v786_v27  ;;  %v946_v22 = vpop.permute.xlu0 %945 }
 0x23a   : > { %v846_v3 = vmul.f32 %v1727_v54, %v838_v62  ;;  %v893_v4 = vmul.f32 %v888_v2, %v2390_v61  ;;  %v871_v17 = vmul.f32 %v866_v15, %v2390_v61  ;;  %v883_v24 = vmul.f32 %v2369_v41, %v2390_v61 }
 0x23b   : > { %v801_v6 = vmul.f32 %v1725_v63, %v794_v0  ;;  %v861_v48 = vmul.f32 %v2354_v39, %v2390_v61 }
 0x23c   : > { %v2399_v7 = vadd.f32 %v1728_v56, %v846_v3  ;;  %897 = vrot.lane.b32.xlu1 %v893_v4, %s2112_s18  ;;  %v921_v20 = vpop.permute.xlu1 %920 }
 0x23d   : > { %v2402_v9 = vadd.f32 %v1726_v5, %v801_v6  ;;  %v1981_v6 = vld [vmem:[%s2641_s4] sm:$0xff]  }
 0x23e   : > { %v894_v11 = vmul.f32 %v890_v52, %v2399_v7  ;;  %v872_v19 = vmul.f32 %v868_v18, %v2399_v7  ;;  %v884_v25 = vmul.f32 %v2374_v42, %v2399_v7  ;;  %v862_v49 = vmul.f32 %v2339_v37, %v2399_v7  ;;  %1803 = vmatpush3.bf16.msra.mxu0 %v1981_v6 }
 0x23f   : > { %v934_v12 = vmul.f32 %v932_v59, %v2402_v9  ;;  %v952_v13 = vmul.f32 %v950_v8, %v2402_v9  ;;  %v965_v16 = vmul.f32 %v963_v14, %v2402_v9  ;;  %v923_v21 = vmul.f32 %v921_v20, %v2402_v9  ;;  %v1982_v8 = vld [vmem:[%s2641_s4 + $0x8] sm:$0xff]   ;;  %1804 = vmatprep.subr.bf16.mxu0 %v2107_v1 }
 0x240   : > { %958 = vrot.lane.b32.xlu1 %v2358_v40, %s2111_s16  ;;  %899 = vrot.lane.b32.xlu0 %v894_v11, %s2112_s18  ;;  %v948_v30 = vmul.f32 %v946_v22, %v2402_v9  ;;  %v929_v34 = vmul.f32 %v2358_v40, %v2402_v9  ;;  %v918_v62 = vmul.f32 %v2346_v38, %v2402_v9  ;;  %v1983_v11 = vld [vmem:[%s2641_s4 + $0x10] sm:$0xff]  }
 0x242   : > { %1805 = vmatpush3.bf16.msra.mxu0 %v1982_v8 }
 0x243   : > { %1806 = vmatprep.subr.bf16.mxu0 %v2107_v1 }
 0x244   : > { %936 = vrot.lane.b32.xlu0 %v934_v12, %s2112_s18  ;;  %954 = vrot.lane.b32.xlu1 %v952_v13, %s2112_s18  ;;  %v1984_v12 = vld [vmem:[%s2641_s4 + $0x18] sm:$0xff]  }
 0x246   : > { %1807 = vmatpush3.bf16.msra.mxu0 %v1983_v11 }
 0x247   : > { %1808 = vmatprep.subr.bf16.mxu0 %v2107_v1 }
 0x248   : > { %967 = vrot.lane.b32.xlu0 %v965_v16, %s2112_s18  ;;  %875 = vrot.lane.b32.xlu1 %v871_v17, %s2112_s18 }
 0x24a   : > { %1809 = vmatpush3.bf16.msra.mxu0 %v1984_v12 }
 0x24b   : > { %1832 = vmatprep.subr.bf16.mxu0 %v2107_v1 }
 0x24c   : > { %877 = vrot.lane.b32.xlu0 %v872_v19, %s2112_s18 }
 0x24d   : > { %1811 = vmatmul.mubr.msk.bf16.vlgmr.msra.gmra.mrb[4].mxu0 %vm579_vm1, %v2318_v10 }
 0x24e   : > { %1834 = vmatprep.mubr.msk.bf16.mxu0 %vm2108_vm0, %v2107_v1 }
 0x250   : > { %925 = vrot.lane.b32.xlu0 %v923_v21, %s2112_s18 }
 0x2ae   : > { %v898_v23 = vpop.permute.xlu1 %897 }
 0x2af   : > { %v903_v28 = vadd.f32 %v898_v23, %v883_v24 }
 0x2b2   : > { %v900_v26 = vpop.permute.xlu0 %899  ;;  %v959_v27 = vpop.permute.xlu1 %958 }
 0x2b3   : > { %v904_v29 = vadd.f32 %v900_v26, %v884_v25  ;;  %v961_v44 = vmul.f32 %v959_v27, %v2402_v9 }
 0x2b5   : > { %v1957_v31 = vpack.i.bf16 %v904_v29, %v903_v28 }
 0x2b6   : > { %v937_v32 = vpop.permute.xlu0 %936  ;;  %v955_v33 = vpop.permute.xlu1 %954 }
 0x2b7   : > { %v957_v35 = vsub.f32 %v948_v30, %v955_v33  ;;  %1958 = vrot.lane.b32.xlu1 %v1957_v31, %s2109_s24  ;;  %v939_v36 = vadd.f32 %v937_v32, %v929_v34 }
 0x2b9   : > { %972 = vrot.lane.b32.xlu0 %v957_v35, %s2113_s14 }
 0x2ba   : > { %v968_v43 = vpop.permute.xlu0 %967  ;;  %v876_v46 = vpop.permute.xlu1 %875 }
 0x2bb   : > { %941 = vrot.lane.b32.xlu1 %v939_v36, %s2109_s24  ;;  %v970_v45 = vadd.f32 %v968_v43, %v961_v44  ;;  %v881_v51 = vsub.f32 %v861_v48, %v876_v46 }
 0x2be   : > { %v878_v47 = vpop.permute.xlu0 %877 }
 0x2bf   : > { %976 = vrot.lane.b32.xlu1 %v970_v45, %s2112_s18  ;;  %v882_v52 = vsub.f32 %v862_v49, %v878_v47 }
 0x2c2   : > { %v926_v57 = vpop.permute.xlu0 %925 }
 0x2c3   : > { %v928_v2 = vsub.f32 %v918_v62, %v926_v57 }
 0x320   : > { %v772_v35 = vpop.f32.mrb[4].mxu0 }
 0x321   : > { %v1812_v36 = vpop.f32.mrb[5].mxu0 }
 0x322   : > { %v775_v43 = vpop.f32.mrb[6].mxu0 }
 0x323   : > { %v2501_v44 = vpack.c.bf16 %v775_v43, %v772_v35  ;;  %v1813_v45 = vpop.f32.mrb[7].mxu0 }
 0x329   : > { %v1959_v50 = vpop.permute.xlu1 %1958 }
 0x32a   : > { %v1961_v53 = vunpack.i.h.bf16 %v1959_v50  ;;  %v1960_v54 = vunpack.i.l.bf16 %v1959_v50 }
 0x32b   : > { %v973_v63 = vpop.permute.xlu0 %972 }
 0x32c   : > { %v915_v55 = vsel %vm913_vm3, %v882_v52, %v1961_v53  ;;  %v914_v56 = vsel %vm913_vm3, %v881_v51, %v1960_v54 }
 0x32d   : > { %v942_v58 = vpop.permute.xlu1 %941  ;;  %v916_v59 = vpack.c.bf16 %v915_v55, %v914_v56 }
 0x32e   : > { %v944_v4 = vsel %vm913_vm3, %v928_v2, %v942_v58  ;;  %v1985_v58 = vld [vmem:[%s2642_s5] sm:$0xff]  }
 0x32f   : > { %v986_v60 = vsel %vm981_vm4, %v916_v59, 0  ;;  %1833 = vmatpush3.bf16.msra.mxu0 %v1985_v58 }
 0x330   : > { %1815 = vmatpush3.bf16.xpose.msra.mxu1 %v986_v60  ;;  %1850 = vmatprep.subr.bf16.mxu0 %v2107_v1 }
 0x331   : > { %v977_v0 = vpop.permute.xlu1 %976  ;;  %1820 = vmatprep.subr.bf16.mxu1 %v2107_v1 }
 0x332   : > { %v979_v3 = vsel %vm913_vm3, %v973_v63, %v977_v0 }
 0x333   : > { %v980_v5 = vpack.c.bf16 %v979_v3, %v944_v4 }
 0x337   : > { %1817 = vmatmul.mubr.msk.bf16.vlgmr.msra.gmra.mrb[4].mxu1 %vm981_vm4, %v980_v5 }
 0x338   : > { %1822 = vmatprep.mubr.msk.bf16.mxu1 %vm2108_vm0, %v2107_v1  ;;  %1821 = vmatpush3.bf16.msra.mxu1 %v2501_v44 }
 0x339   : > { %1826 = vmatprep.subr.bf16.mxu1 %v2107_v1 }
 0x40a   : > { %v1022_v13 = vpop.f32.mrb[4].mxu1 }
 0x40b   : > { %v1818_v14 = vpop.f32.mrb[5].mxu1  ;;  %v1029_v15 = vsel %vm981_vm4, %v1022_v13, -inf }
 0x40c   : > { %1030 = vmax.xlane.f32.xlu0 %v1029_v15  ;;  %v1025_v16 = vpop.f32.mrb[6].mxu1 }
 0x40d   : > { %v1819_v17 = vpop.f32.mrb[7].mxu1  ;;  %v1032_v18 = vsel %vm981_vm4, %v1025_v16, -inf }
 0x40e   : > { %1033 = vmax.xlane.f32.xlu1 %v1032_v18 }
 0x41f   : > { %1210 = vrot.lane.b32.xlu1 %v2374_v42, %s2110_s25 }
 0x423   : > { %1234 = vrot.lane.b32.xlu1 %v2354_v39, %s2110_s25 }
 0x427   : > { %1236 = vrot.lane.b32.xlu1 %v2339_v37, %s2110_s25 }
 0x42b   : > { %1288 = vrot.lane.b32.xlu1 %v2346_v38, %s2114_s26 }
 0x42f   : > { %1323 = vrot.lane.b32.xlu1 %v2346_v38, %s2115_s27 }
 0x433   : > { %1202 = vrot.lane.b32.xlu1 %v2339_v37, %s2111_s16 }
 0x437   : > { %1228 = vrot.lane.b32.xlu1 %v2374_v42, %s2111_s16 }
 0x499   : > { %v1031_v10 = vpop.xlane.xlu0 %1030 }
 0x49a   : > { %v1035_v19 = vsub.f32 %v1022_v13, %v1031_v10 }
 0x49b   : > { %v1034_v20 = vpop.xlane.xlu1 %1033 }
 0x49c   : > { %v1037_v21 = vmul.f32 1.442695, %v1035_v19  ;;  %v1036_v22 = vsub.f32 %v1025_v16, %v1034_v20 }
 0x49e   : > { %1995 = vpow2.f32 %v1037_v21  ;;  %v1039_v23 = vmul.f32 1.442695, %v1036_v22 }
 0x49f   : > { %v1211_v24 = vpop.permute.xlu1 %1210 }
 0x4a0   : > { %1997 = vpow2.f32 %v1039_v23  ;;  %v1215_v25 = vmul.f32 %v1211_v24, %v2399_v7 }
 0x4a2   : > { %1220 = vrot.lane.b32.xlu1 %v1215_v25, %s2112_s18 }
 0x4a3   : > { %v1235_v26 = vpop.permute.xlu1 %1234 }
 0x4a4   : > { %v1240_v51 = vmul.f32 %v1235_v26, %v2390_v61 }
 0x4a7   : > { %v1237_v27 = vpop.permute.xlu1 %1236 }
 0x4a8   : > { %v1996_v28 = vpop.eup %1995  ;;  %v1241_v37 = vmul.f32 %v1237_v27, %v2399_v7 }
 0x4a9   : > { %v1041_v42 = vsel %vm981_vm4, %v1996_v28, 0.0 }
 0x4aa   : > { %v1998_v29 = vpop.eup %1997  ;;  %1042 = vadd.xlane.f32.xlu0 %v1041_v42  ;;  %1246 = vrot.lane.b32.xlu1 %v1241_v37, %s2112_s18 }
 0x4ab   : > { %v1044_v30 = vsel %vm981_vm4, %v1998_v29, 0.0  ;;  %v1289_v31 = vpop.permute.xlu1 %1288 }
 0x4ac   : > { %v1291_v32 = vmul.f32 %v1289_v31, %v2402_v9 }
 0x4ae   : > { %1045 = vadd.xlane.f32.xlu0 %v1044_v30  ;;  %1284 = vrot.lane.b32.xlu1 %v2358_v40, %s2116_s29 }
 0x4af   : > { %v1324_v33 = vpop.permute.xlu1 %1323 }
 0x4b0   : > { %v1326_v34 = vmul.f32 %v1324_v33, %v2402_v9 }
 0x4b2   : > { %1319 = vrot.lane.b32.xlu1 %v2358_v40, %s2117_s22 }
 0x4b3   : > { %v1203_v57 = vpop.permute.xlu1 %1202 }
 0x4b4   : > { %v1207_v3 = vmul.f32 %v1203_v57, %v2399_v7 }
 0x4b6   : > { %1293 = vrot.lane.b32.xlu1 %v1291_v32, %s2112_s18 }
 0x4b7   : > { %v1229_v59 = vpop.permute.xlu1 %1228 }
 0x4b8   : > { %v1233_v12 = vmul.f32 %v1229_v59, %v2399_v7 }
 0x4ba   : > { %1328 = vrot.lane.b32.xlu1 %v1326_v34, %s2112_s18 }
 0x4c4   : > { %1208 = vrot.lane.b32.xlu0 %v2369_v41, %s2110_s25  ;;  %s1742_s25 = sshll.u32 %s2681_s23, 1 }
 0x4c8   : > { %1275 = vrot.lane.b32.xlu0 %v2358_v40, %s2114_s26  ;;  %s2685_s26 = smov %s2684_s19 }
 0x4cc   : > { %1310 = vrot.lane.b32.xlu0 %v2358_v40, %s2115_s27  ;;  %s2122_s27 = smov [#allocation2]  }
 0x4d0   : > { %1200 = vrot.lane.b32.xlu0 %v2354_v39, %s2111_s16 }
 0x4d4   : > { %1226 = vrot.lane.b32.xlu0 %v2369_v41, %s2111_s16 }
 0x514   : > { %v1221_v60 = vpop.permute.xlu1 %1220 }
 0x515   : > { %v1225_v8 = vsub.f32 %v1207_v3, %v1221_v60 }
 0x51c   : > { %v1247_v62 = vpop.permute.xlu1 %1246 }
 0x51d   : > { %v1251_v16 = vadd.f32 %v1247_v62, %v1233_v12 }
 0x520   : > { %v1285_v0 = vpop.permute.xlu1 %1284 }
 0x521   : > { %v1287_v20 = vmul.f32 %v1285_v0, %v2402_v9 }
 0x524   : > { %v1320_v5 = vpop.permute.xlu1 %1319 }
 0x525   : > { %v1322_v7 = vmul.f32 %v1320_v5, %v2402_v9 }
 0x528   : > { %v1294_v18 = vpop.permute.xlu1 %1293 }
 0x529   : > { %v1296_v21 = vadd.f32 %v1294_v18, %v1287_v20 }
 0x52c   : > { %v1329_v22 = vpop.permute.xlu1 %1328 }
 0x537   : > { %v1043_v46 = vpop.xlane.xlu0 %1042 }
 0x538   : > { %1999 = vrcp.f32 %v1043_v46 }
 0x53b   : > { %v1046_v47 = vpop.xlane.xlu0 %1045 }
 0x53c   : > { %2001 = vrcp.f32 %v1046_v47 }
 0x53f   : > { %v1209_v48 = vpop.permute.xlu0 %1208 }
 0x540   : > { %v1214_v49 = vmul.f32 %v1209_v48, %v2390_v61 }
 0x542   : > { %1218 = vrot.lane.b32.xlu0 %v1214_v49, %s2112_s18  ;;  %v2000_v50 = vpop.eup %1999 }
 0x543   : > { %v1049_v40 = vmul.f32 %v2000_v50, %v1996_v28  ;;  %v1276_v41 = vpop.permute.xlu0 %1275 }
 0x544   : > { %v1278_v54 = vmul.f32 %v1276_v41, %v2402_v9 }
 0x546   : > { %v2002_v52 = vpop.eup %2001  ;;  %1244 = vrot.lane.b32.xlu0 %v1240_v51, %s2112_s18 }
 0x547   : > { %v1050_v39 = vmul.f32 %v2002_v52, %v1998_v29  ;;  %v1311_v55 = vpop.permute.xlu0 %1310 }
 0x548   : > { %v1313_v56 = vmul.f32 %v1311_v55, %v2402_v9 }
 0x549   : > { %v1051_v53 = vpack.c.bf16 %v1050_v39, %v1049_v40 }
 0x54a   : > { %1271 = vrot.lane.b32.xlu0 %v2346_v38, %s2116_s29  ;;  %s521_s29 = sand.u32 1, %s2081_s30  }
 0x54b   : > { %1823 = vmatmul.mubr.msk.bf16.vlgmr.msra.gmra.mrb[8].mxu1 %vm981_vm4, %v1051_v53  ;;  %v1201_v63 = vpop.permute.xlu0 %1200  ;;  %s1568_s23 = scalar_lea.sflag [#allocation3], %s521_s29 }
 0x54c   : > { %1828 = vmatprep.mubr.msk.bf16.mxu1 %vm2108_vm0, %v2107_v1  ;;  %v1206_v4 = vmul.f32 %v1201_v63, %v2390_v61 }
 0x54e   : > { %1306 = vrot.lane.b32.xlu0 %v2346_v38, %s2117_s22  ;;  %v1986_v38 = vld [vmem:[%s2642_s5 + $0x8] sm:$0xff]   ;;  %s1702_s22 = sshll.u32 %s521_s29, 3 }
 0x54f   : > { %1827 = vmatpush3.bf16.msra.mxu1 %v1986_v38  ;;  %v1227_v2 = vpop.permute.xlu0 %1226 }
 0x550   : > { %1838 = vmatprep.subr.bf16.mxu1 %v2107_v1  ;;  %v1232_v13 = vmul.f32 %v1227_v2, %v2390_v61  ;;  %v1331_v61 = vadd.f32 %v1329_v22, %v1322_v7  ;;  %v1988_v22 = vld [vmem:[%s2642_s5 + $0x18] sm:$0xff]  }
 0x552   : > { %1280 = vrot.lane.b32.xlu0 %v1278_v54, %s2112_s18 }
 0x556   : > { %1315 = vrot.lane.b32.xlu0 %v1313_v56, %s2112_s18 }
 0x5b4   : > { %v1219_v6 = vpop.permute.xlu0 %1218 }
 0x5b5   : > { %v1224_v11 = vsub.f32 %v1206_v4, %v1219_v6 }
 0x5b7   : > { %v1962_v14 = vpack.i.bf16 %v1225_v8, %v1224_v11 }
 0x5b8   : > { %v1245_v15 = vpop.permute.xlu0 %1244 }
 0x5b9   : > { %v1250_v17 = vadd.f32 %v1245_v15, %v1232_v13  ;;  %1963 = vrot.lane.b32.xlu0 %v1962_v14, %s2113_s14  ;;  %v1987_v14 = vld [vmem:[%s2642_s5 + $0x10] sm:$0xff]  }
 0x5bb   : > { %v1967_v10 = vpack.i.bf16 %v1251_v16, %v1250_v17 }
 0x5bc   : > { %v1272_v19 = vpop.permute.xlu0 %1271 }
 0x5bd   : > { %1968 = vrot.lane.b32.xlu1 %v1967_v10, %s2112_s18  ;;  %v1274_v24 = vmul.f32 %v1272_v19, %v2402_v9  ;;  %s2121_s18 = smov 80  }
 0x5c0   : > { %v1307_v23 = vpop.permute.xlu0 %1306 }
 0x5c1   : > { %1302 = vrot.lane.b32.xlu1 %v1296_v21, %s2118_s28  ;;  %v1309_v27 = vmul.f32 %v1307_v23, %v2402_v9  ;;  %s523_s28 = scalar_lea.vmem [#allocation2], %s1702_s22  ;;  %s2015_s22 = sshll.u32 %s2122_s27, 4  ;;  %s2016_s22 = int_to_ptr.vmem [resolvable:$false] %s2015_s22 }
 0x5c4   : > { %v1281_v25 = vpop.permute.xlu0 %1280 }
 0x5c5   : > { %v1283_v26 = vsub.f32 %v1274_v24, %v1281_v25  ;;  %1337 = vrot.lane.b32.xlu1 %v1331_v61, %s2119_s15  ;;  %s1583_s15 = sshll.u32 %s523_s28, 4  ;;  %s2585_s15 = int_to_ptr.vmem [resolvable:$true] %s1583_s15 }
 0x5c6   : > { %p2018_p4 = scmp.lt.s32.totalorder %s2585_s15, %s2016_s22 }
 0x5c7   : > { %1298 = vrot.lane.b32.xlu0 %v1283_v26, %s2120_s17 }
 0x5c8   : > { %v1316_v28 = vpop.permute.xlu0 %1315 }
 0x5c9   : > { %v1318_v37 = vsub.f32 %v1309_v27, %v1316_v28 }
 0x5cb   : > { %1333 = vrot.lane.b32.xlu0 %v1318_v37, %s2121_s18 }
 0x61e   : > { %v1089_v42 = vpop.f32.mrb[8].mxu1 }
 0x61f   : > { %v1096_v29 = vpack.c.bf16 %v1089_v42, %v1089_v42  ;;  %v1824_v30 = vpop.f32.mrb[9].mxu1 }
 0x620   : > { %v1092_v31 = vpop.f32.mrb[10].mxu1 }
 0x621   : > { %v1099_v32 = vpack.c.bf16 %v1092_v31, %v1092_v31  ;;  %v1825_v33 = vpop.f32.mrb[11].mxu1  ;;  %1835 = vmatmul.mubr.msk.bf16.vlgmr.msra.gmra.mrb[8].mxu0 %vm981_vm4, %v1096_v29 }
 0x622   : > { %1852 = vmatprep.mubr.msk.bf16.mxu0 %vm2108_vm0, %v2107_v1  ;;  %1851 = vmatpush3.bf16.msra.mxu0 %v1987_v14 }
 0x623   : > { %1829 = vmatmul.mubr.msk.bf16.vlgmr.msra.gmra.mrb[12].mxu1 %vm981_vm4, %v1099_v32  ;;  %1856 = vmatprep.subr.bf16.mxu0 %v2107_v1 }
 0x624   : > { %1840 = vmatprep.mubr.msk.bf16.mxu1 %vm2108_vm0, %v2107_v1 }
 0x62b   : > { %v1964_v9 = vpop.permute.xlu0 %1963 }
 0x62c   : > { %v1966_v35 = vunpack.i.h.bf16 %v1964_v9  ;;  %v1965_v36 = vunpack.i.l.bf16 %v1964_v9 }
 0x62f   : > { %v1969_v34 = vpop.permute.xlu1 %1968 }
 0x630   : > { %v1971_v43 = vunpack.i.h.bf16 %v1969_v34  ;;  %v1970_v45 = vunpack.i.l.bf16 %v1969_v34 }
 0x632   : > { %v1269_v46 = vsel %vm913_vm3, %v1966_v35, %v1971_v43  ;;  %v1268_v47 = vsel %vm913_vm3, %v1965_v36, %v1970_v45 }
 0x633   : > { %v1270_v48 = vpack.c.bf16 %v1269_v46, %v1268_v47  ;;  %v1303_v50 = vpop.permute.xlu1 %1302 }
 0x635   : > { %v1346_v49 = vsel %vm981_vm4, %v1270_v48, 0 }
 0x636   : > { %1839 = vmatpush3.bf16.xpose.msra.mxu1 %v1346_v49 }
 0x637   : > { %1844 = vmatprep.subr.bf16.mxu1 %v2107_v1  ;;  %v1338_v52 = vpop.permute.xlu1 %1337 }
 0x639   : > { %v1299_v51 = vpop.permute.xlu0 %1298 }
 0x63a   : > { %v1305_v39 = vsel %vm913_vm3, %v1299_v51, %v1303_v50 }
 0x63d   : > { %v1334_v40 = vpop.permute.xlu0 %1333 }
 0x63e   : > { %v1340_v53 = vsel %vm913_vm3, %v1334_v40, %v1338_v52 }
 0x63f   : > { %v1341_v41 = vpack.c.bf16 %v1340_v53, %v1305_v39 }
 0x641   : > { %1841 = vmatmul.mubr.msk.bf16.vlgmr.msra.gmra.mrb[16].mxu1 %vm981_vm4, %v1341_v41 }
 0x642   : > { %1846 = vmatprep.mubr.msk.bf16.mxu1 %vm2108_vm0, %v2107_v1 }
 0x6f6   : > { %v1145_v54 = vpop.f32.mrb[12].mxu1 }
 0x6f7   : > { %v1830_v55 = vpop.f32.mrb[13].mxu1 }
 0x6f8   : > { %v1148_v56 = vpop.f32.mrb[14].mxu1 }
 0x6f9   : > { %v1831_v57 = vpop.f32.mrb[15].mxu1 }
 0x714   : > { %v1382_v58 = vpop.f32.mrb[16].mxu1 }
 0x715   : > { %v1842_v59 = vpop.f32.mrb[17].mxu1  ;;  %v1389_v38 = vsel %vm981_vm4, %v1382_v58, -inf }
 0x716   : > { %1390 = vmax.xlane.f32.xlu0 %v1389_v38  ;;  %v1385_v60 = vpop.f32.mrb[18].mxu1 }
 0x717   : > { %v1843_v62 = vpop.f32.mrb[19].mxu1  ;;  %v1392_v63 = vsel %vm981_vm4, %v1385_v60, -inf }
 0x718   : > { %1393 = vmax.xlane.f32.xlu1 %v1392_v63 }
 0x7a3   : > { %v1391_v0 = vpop.xlane.xlu0 %1390 }
 0x7a4   : > { %v1395_v2 = vsub.f32 %v1382_v58, %v1391_v0 }
 0x7a5   : > { %v1394_v3 = vpop.xlane.xlu1 %1393 }
 0x7a6   : > { %v1397_v4 = vmul.f32 1.442695, %v1395_v2  ;;  %v1396_v5 = vsub.f32 %v1385_v60, %v1394_v3 }
 0x7a8   : > { %2003 = vpow2.f32 %v1397_v4  ;;  %v1399_v6 = vmul.f32 1.442695, %v1396_v5 }
 0x7aa   : > { %2005 = vpow2.f32 %v1399_v6 }
 0x7b2   : > { %v2004_v8 = vpop.eup %2003 }
 0x7b3   : > { %v1401_v11 = vsel %vm981_vm4, %v2004_v8, 0.0 }
 0x7b4   : > { %v2006_v12 = vpop.eup %2005  ;;  %1402 = vadd.xlane.f32.xlu0 %v1401_v11 }
 0x7b5   : > { %v1404_v13 = vsel %vm981_vm4, %v2006_v12, 0.0 }
 0x7b8   : > { %1405 = vadd.xlane.f32.xlu0 %v1404_v13 }
 0x7ce   : > { %1413 = vrot.lane.b32.xlu0 %v2501_v44, %s2113_s14  ;;  %s2682_s14 = sld [smem:[#allocation7_spill]] }
 0x7d4   : > { %s1579_s24 = sadd.s32 %s2682_s14, %s1742_s25  ;;  %s2011_s14 = scalar_lea.vmem %s2585_s15, 128 }
 0x7d5   : > { %s1743_s21 = sshll.u32 %s1579_s24, 7  ;;  %p2012_p0 = scmp.ne.s32.totalorder %s2585_s15, %s2011_s14 }
 0x7d6   : > { %s2583_s20 = scalar_lea.hbm %s2684_s19, %s1743_s21  ;;  %s2017_s25 = scalar_lea.vmem %s2016_s22, 256 }
 0x7d7   : > { %p2013_p1 = pnand %p2012_p0, %p2249_p3  ;;  %p2019_p5 = scmp.lt.s32.totalorder %s2017_s25, %s2011_s14 }
 0x7d9   : > { %p2014_p2 = pneg %p2013_p1  ;;  %p2020_p6 = por %p2019_p5, %p2018_p4 }
 0x7db   : > { %p2021_p7 = pnand %p2020_p6, %p2014_p2 }
 0x841   : > { %v1403_v15 = vpop.xlane.xlu0 %1402 }
 0x842   : > { %2007 = vrcp.f32 %v1403_v15 }
 0x845   : > { %v1406_v16 = vpop.xlane.xlu0 %1405 }
 0x846   : > { %2009 = vrcp.f32 %v1406_v16 }
 0x849   : > { %v1414_v17 = vpop.permute.xlu0 %1413 }
 0x84a   : > { %1845 = vmatpush3.bf16.msra.mxu1 %v1414_v17 }
 0x84c   : > { %v2008_v18 = vpop.eup %2007 }
 0x84d   : > { %v1409_v19 = vmul.f32 %v2008_v18, %v2004_v8 }
 0x850   : > { %v2010_v10 = vpop.eup %2009 }
 0x851   : > { %v1410_v20 = vmul.f32 %v2010_v10, %v2006_v12 }
 0x853   : > { %v1411_v44 = vpack.c.bf16 %v1410_v20, %v1409_v19 }
 0x855   : > { %1847 = vmatmul.mubr.msk.bf16.vlgmr.msra.gmra.mrb[20].mxu1 %vm981_vm4, %v1411_v44 }
 0x928   : > { %v1453_v21 = vpop.f32.mrb[20].mxu1 }
 0x929   : > { %v1460_v23 = vpack.c.bf16 %v1453_v21, %v1453_v21  ;;  %v1848_v7 = vpop.f32.mrb[21].mxu1 }
 0x92a   : > { %v1456_v61 = vpop.f32.mrb[22].mxu1 }
 0x92b   : > { %v1849_v24 = vpop.f32.mrb[23].mxu1  ;;  %1853 = vmatmul.mubr.msk.bf16.vlgmr.msra.gmra.mrb[8].mxu0 %vm981_vm4, %v1460_v23  ;;  %v1513_v25 = vpack.c.bf16 %v1456_v61, %v1456_v61 }
 0x92c   : > { %1857 = vmatpush3.bf16.msra.mxu0 %v1988_v22  ;;  %1858 = vmatprep.mubr.msk.bf16.mxu0 %vm2108_vm0, %v2107_v1 }
 0x937   : > { %1859 = vmatmul.mubr.msk.bf16.vlgmr.msra.gmra.mrb[8].mxu0 %vm981_vm4, %v1513_v25 }
 0xa0a   : > { %v1559_v26 = vpop.f32.mrb[8].mxu0 }
 0xa0b   : > { %v1862_v27 = vadd.f32 %v1559_v26, %v1145_v54  ;;  %v1860_v28 = vpop.f32.mrb[9].mxu0 }
 0xa0c   : > { %v1562_v1 = vpop.f32.mrb[10].mxu0 }
 0xa0d   : > { %v1861_v37 = vpop.f32.mrb[11].mxu0  ;;  %1566 = vst.msk [vmem:[%s523_s28] sm:$0xff] %vm579_vm1, %v1862_v27 }
 0xa0e   : > { %2024 = shalt.err (!%p2021_p7)
}
 0xa0f   : > { %s2025_s29 = scalar_lea.hbm %s2583_s20, 128  ;;  %s2029_s28 = scalar_lea.hbm %s2685_s26, 512 }
 0xa10   : > { %p2026_p9 = scmp.ne.s32.totalorder %s2583_s20, %s2025_s29  ;;  %p2030_p12 = scmp.lt.u32.totalorder %s2583_s20, %s2685_s26 }
 0xa11   : > { %p2031_p13 = scmp.lt.u32.totalorder %s2029_s28, %s2025_s29  ;;  %p2033_p1 = scmp.lt.u32.totalorder %s2025_s29, %s2583_s20 }
 0xa12   : > { %p2027_p10 = pnand %p2026_p9, %p2249_p3 }
 0xa13   : > { %p2032_p0 = por %p2031_p13, %p2030_p12 }
 0xa14   : > { %p2028_p11 = pneg %p2027_p10 }
 0xa15   : > { %p2034_p2 = por %p2033_p1, %p2032_p0 }
 0xa17   : > { %p2035_p4 = pnand %p2034_p2, %p2028_p11 }
 0xa19   : > { %2038 = shalt.err (!%p2035_p4)
}
 0xa1a   : > { %1871 = dma.vmem_to_hbm [thread:$0]  (%p2249_p3), %s2585_s15, 128, %s2583_s20, %s1568_s23  }
 0xa1b PF: > { %s2686_s19 = sld [smem:[#allocation11_spill]]  ;;  %s2687_s14 = sld [smem:[#allocation5_spill]] }
 0xa21   : > { %p1877_p5 = scmp.ge.s32.totalorder %s2686_s19, 2  ;;  %s1595_s22 = sand.u32 1, %s2687_s14  }
 0xa22   : > { %s1596_s25 = scalar_lea.sflag [#allocation3], %s1595_s22 }
 0xa23   : > { %p1874_p6 = pnand %p1877_p5, %p2258_p8 }
 0xa25   : > { %2072 = dma.done.wait (!%p1874_p6), %s1596_s25, 128  }
 0xa26   : > { %2074 = vsyncadd (!%p1874_p6), %s1596_s25, 4294967168  ;;  %s27_s20 = sadd.s32 1, %s2686_s19   ;;  %s2689_s24 = sld [smem:[#allocation6_spill]] }
 0xa27   : > { %p24_p7 = scmp.ge.s32.totalorder %s27_s20, 6   ;;  %s2690_s15 = sld [smem:[#allocation16_spill]] }
 0xa28   : > { %s2691_s16 = sld [smem:[#allocation9_spill]]  ;;  %s2692_s17 = sld [smem:[#allocation10_spill]] }
 0xa29   : > { %s2693_s18 = sld [smem:[#allocation12_spill]]  ;;  %s2694_s19 = sld [smem:[#allocation14_spill]] }
 0xa2a   : > { %s2695_s29 = smov %s2081_s30  ;;  %26 = sbr.rel (!%p24_p7) target bundleno = 7 (0x7), region = 120 }
 0xa2c   : > { %s2696_s30 = smov %s2689_s24 }
 0xa31   :  { %1601 = vsyncpa [#allocation3], 1 }
 0xa32   :  { %1603 = vsyncpa [#allocation3 + $0x1], 1 }

</bundles_post_ra>
